<compile_context>
chip_gen: v5e
topology: v5e:2x2
jax: 0.10.0
libtpu: 0.0.40
codegen_flags: <defaults>
</compile_context>

<pallas_src>
import functools
import math

import jax
import jax.numpy as jnp
from jax.experimental import pallas as pl
from jax.experimental.pallas import tpu as pltpu

EPS = 1e-6


# ----------------------------- in-kernel helpers -----------------------------

def _layer_norm(x, a, b, eps):
    # Matches the PyTorch LayerNorm: unbiased std (d-1), eps added to std.
    d = x.shape[-1]
    mean = jnp.mean(x, axis=-1, keepdims=True)
    diff = x - mean
    var = jnp.sum(diff * diff, axis=-1, keepdims=True) * (1.0 / (d - 1))
    std = jnp.sqrt(var)
    return a * diff / (std + eps) + b


# ----------------------------- fused encoder-stack kernel -----------------------------

def encoder_stack_kernel(x_ref, bias_ref,
                         ln1a, ln1b, wqkv, bqkv, wo, bo,
                         ln2a, ln2b, w1, b1, w2, b2,
                         fna, fnb, o_ref, *, h, eps):
    l = pl.program_id(1)
    n_layers = pl.num_programs(1)

    @pl.when(l == 0)
    def _():
        o_ref[...] = x_ref[...]          # seed the VMEM-resident residual stream

    x = o_ref[...]                       # (S, D) f32 residual, resident across layer axis
    S, D = x.shape
    dk = D // h

    bias = bias_ref[...]                 # (1, S) additive key-mask bias (0 / -1e9)

    # ---------------- sublayer 1: x + SelfAttn(LN1(x)) ----------------
    xn = _layer_norm(x, ln1a[...], ln1b[...], eps)
    # fused QKV projection: bf16 operands, f32 accumulation (scale pre-folded into Q cols)
    qkv = jnp.dot(xn.astype(jnp.bfloat16), wqkv[...],
                  preferred_element_type=jnp.float32) + bqkv[...]

    heads = []
    for i in range(h):                   # static unroll (h is small here)
        lo = i * dk
        q_h = qkv[:, lo:lo + dk].astype(jnp.bfloat16)
        k_h = qkv[:, D + lo:D + lo + dk].astype(jnp.bfloat16)
        v_h = qkv[:, 2 * D + lo:2 * D + lo + dk].astype(jnp.bfloat16)
        # q @ k^T without an explicit K transpose (contract on last dim of both)
        s = jax.lax.dot_general(q_h, k_h, (((1,), (1,)), ((), ())),
                                preferred_element_type=jnp.float32)
        s = s + bias                     # (S,S) + (1,S): cheap sublane broadcast
        s_max = jnp.max(s, axis=-1, keepdims=True)
        p = jnp.exp(s - s_max)
        p = p * pl.reciprocal(jnp.sum(p, axis=-1, keepdims=True), approx=True)
        heads.append(jnp.dot(p.astype(jnp.bfloat16), v_h,
                             preferred_element_type=jnp.float32))
    ctx = jnp.concatenate(heads, axis=-1)      # single lane-dense head assembly

    attn = jnp.dot(ctx.astype(jnp.bfloat16), wo[...],
                   preferred_element_type=jnp.float32) + bo[...]
    x1 = x + attn                        # residual fused in-kernel

    # ---------------- sublayer 2: x1 + FFN(LN2(x1)) ----------------
    xn2 = _layer_norm(x1, ln2a[...], ln2b[...], eps)
    hdn = jnp.dot(xn2.astype(jnp.bfloat16), w1[...],
                  preferred_element_type=jnp.float32) + b1[...]
    hdn = jnp.maximum(hdn, 0.0)
    ffn = jnp.dot(hdn.astype(jnp.bfloat16), w2[...],
                  preferred_element_type=jnp.float32) + b2[...]
    out = x1 + ffn                       # residual fused in-kernel

    o_ref[...] = out                     # residual stays resident for layer l+1

    @pl.when(l == n_layers - 1)          # final Encoder LayerNorm folded into last layer
    def _():
        o_ref[...] = _layer_norm(out, fna[...], fnb[...], eps)


def encoder_pallas(x, mask_bias, sp, h):
    """One pallas_call for the whole N-layer encoder stack + final norm."""
    B, S, D = x.shape
    n_layers = sp["wqkv"].shape[0]

    weights = [sp["ln1_a"], sp["ln1_b"], sp["wqkv"], sp["bqkv"], sp["wo"], sp["bo"],
               sp["ln2_a"], sp["ln2_b"], sp["w1"], sp["b1"], sp["w2"], sp["b2"]]

    def stacked_spec(w):
        # (n_layers, r, c): layer axis drives weight prefetch (layer l+1 behind layer l)
        return pl.BlockSpec((None,) + w.shape[1:], lambda b, l: (l, 0, 0))

    in_specs = [
        pl.BlockSpec((None, S, D), lambda b, l: (b, 0, 0)),   # x (only consumed at l==0)
        pl.BlockSpec((None, 1, S), lambda b, l: (b, 0, 0)),   # additive key-mask bias
    ] + [stacked_spec(w) for w in weights] + [
        pl.BlockSpec((1, D), lambda b, l: (0, 0)),            # final norm a
        pl.BlockSpec((1, D), lambda b, l: (0, 0)),            # final norm b
    ]

    grid_spec = pltpu.PrefetchScalarGridSpec(
        num_scalar_prefetch=0,
        grid=(B, n_layers),
        in_specs=in_specs,
        # constant block index along l => residual stream stays resident in VMEM,
        # written back to HBM only once per batch block
        out_specs=pl.BlockSpec((None, S, D), lambda b, l: (b, 0, 0)),
    )

    kernel = functools.partial(encoder_stack_kernel, h=h, eps=EPS)

    return pl.pallas_call(
        kernel,
        out_shape=jax.ShapeDtypeStruct((B, S, D), jnp.float32),
        grid_spec=grid_spec,
        input_output_aliases={0: 0},     # output reuses the residual HBM buffer
        compiler_params=pltpu.CompilerParams(
            dimension_semantics=("parallel", "arbitrary"),   # megacore over batch
            vmem_limit_bytes=48 * 1024 * 1024),
    )(x, mask_bias, *weights, sp["norm_a"], sp["norm_b"])


@functools.partial(jax.jit, static_argnames=("h",))
def encoder_forward(x, mask, pparams, h):
    """Encoder.forward: one fused pallas_call over (batch, layer)."""
    # (B, 1, S) additive bias: 0 where valid, -1e9 where padded (cheap, fused by XLA)
    mask_bias = jnp.where(mask > 0, 0.0, -1e9).astype(jnp.float32)
    return encoder_pallas(x, mask_bias, pparams, h)


# ----------------------------- param handling -----------------------------

def init_params(key, n_layers, d_model, h, d_ff):
    def dense(k, fan_in, fan_out):
        w = jax.random.normal(k, (fan_in, fan_out), jnp.float32) * 0.02
        b = jnp.zeros((1, fan_out), jnp.float32)
        return w, b

    layers = []
    for _ in range(n_layers):
        key, *ks = jax.random.split(key, 7)
        wq, bq = dense(ks[0], d_model, d_model)
        wk, bk = dense(ks[1], d_model, d_model)
        wv, bv = dense(ks[2], d_model, d_model)
        wo, bo = dense(ks[3], d_model, d_model)
        w1, b1 = dense(ks[4], d_model, d_ff)
        w2, b2 = dense(ks[5], d_ff, d_model)
        layers.append({
            "ln1_a": jnp.ones((1, d_model), jnp.float32),
            "ln1_b": jnp.zeros((1, d_model), jnp.float32),
            "ln2_a": jnp.ones((1, d_model), jnp.float32),
            "ln2_b": jnp.zeros((1, d_model), jnp.float32),
            "attn": {"h": h, "wq": wq, "bq": bq, "wk": wk, "bk": bk,
                     "wv": wv, "bv": bv, "wo": wo, "bo": bo},
            "ffn": {"w1": w1, "b1": b1, "w2": w2, "b2": b2},
        })
    return {
        "layers": layers,
        "norm_a": jnp.ones((1, d_model), jnp.float32),
        "norm_b": jnp.zeros((1, d_model), jnp.float32),
    }


def prepare_pallas_params(params, h):
    """Stack per-layer weights along a leading (n_layers, ...) axis, fuse Q/K/V,
    fold 1/sqrt(dk) into the Q projection, and store matmul weights in bf16."""
    d_model = params["layers"][0]["attn"]["wq"].shape[0]
    dk = d_model // h
    scale = 1.0 / math.sqrt(dk)

    def stack(get, dtype=None):
        w = jnp.stack([get(lp) for lp in params["layers"]], axis=0)
        return w.astype(dtype) if dtype is not None else w

    def qkv_w(lp):
        a = lp["attn"]
        return jnp.concatenate([a["wq"] * scale, a["wk"], a["wv"]], axis=1)

    def qkv_b(lp):
        a = lp["attn"]
        return jnp.concatenate([a["bq"] * scale, a["bk"], a["bv"]], axis=1)

    return {
        "ln1_a": stack(lambda lp: lp["ln1_a"]),
        "ln1_b": stack(lambda lp: lp["ln1_b"]),
        "ln2_a": stack(lambda lp: lp["ln2_a"]),
        "ln2_b": stack(lambda lp: lp["ln2_b"]),
        "wqkv": stack(qkv_w, jnp.bfloat16),
        "bqkv": stack(qkv_b),
        "wo": stack(lambda lp: lp["attn"]["wo"], jnp.bfloat16),
        "bo": stack(lambda lp: lp["attn"]["bo"]),
        "w1": stack(lambda lp: lp["ffn"]["w1"], jnp.bfloat16),
        "b1": stack(lambda lp: lp["ffn"]["b1"]),
        "w2": stack(lambda lp: lp["ffn"]["w2"], jnp.bfloat16),
        "b2": stack(lambda lp: lp["ffn"]["b2"]),
        "norm_a": params["norm_a"],
        "norm_b": params["norm_b"],
    }


# ----------------------------- pure-JAX reference -----------------------------

def ref_layernorm(x, a, b):
    mean = jnp.mean(x, axis=-1, keepdims=True)
    std = jnp.std(x, axis=-1, keepdims=True, ddof=1)
    return a * (x - mean) / (std + EPS) + b


def ref_mha(x, mask, p):
    B, S, D = x.shape
    h = p["h"]
    dk = D // h

    def proj(w, b):
        return (x.reshape(B * S, D) @ w + b).reshape(B, S, h, dk).transpose(0, 2, 1, 3)

    q, k, v = proj(p["wq"], p["bq"]), proj(p["wk"], p["bk"]), proj(p["wv"], p["bv"])
    scores = jnp.einsum("bhqd,bhkd->bhqk", q, k) / math.sqrt(dk)
    scores = jnp.where(mask[:, None, :, :] > 0, scores, -1e9)
    pattn = jax.nn.softmax(scores, axis=-1)
    ctx = jnp.einsum("bhqk,bhkd->bhqd", pattn, v).transpose(0, 2, 1, 3).reshape(B * S, D)
    return (ctx @ p["wo"] + p["bo"]).reshape(B, S, D)


def ref_encoder(x, mask, params):
    for lp in params["layers"]:
        xn = ref_layernorm(x, lp["ln1_a"], lp["ln1_b"])
        x = x + ref_mha(xn, mask, lp["attn"])
        xn = ref_layernorm(x, lp["ln2_a"], lp["ln2_b"])
        f = lp["ffn"]
        B, S, D = x.shape
        hdn = jnp.maximum(xn.reshape(B * S, D) @ f["w1"] + f["b1"], 0.0)
        x = x + (hdn @ f["w2"] + f["b2"]).reshape(B, S, D)
    return ref_layernorm(x, params["norm_a"], params["norm_b"])


# ----------------------------- main -----------------------------

if __name__ == "__main__":
    B, S, D, H, DFF, N = 2, 8, 32, 4, 64, 2

    key = jax.random.PRNGKey(0)
    key, kx, kp = jax.random.split(key, 3)
    x = jax.random.normal(kx, (B, S, D), jnp.float32)

    # src mask (batch, 1, seq): 1 = valid token, 0 = padding
    lengths = jnp.array([S, S - 2], dtype=jnp.int32)
    mask = (jnp.arange(S)[None, :] < lengths[:, None]).astype(jnp.int32)[:, None, :]

    params = init_params(kp, N, D, H, DFF)
    pparams = prepare_pallas_params(params, H)

    out = encoder_forward(x, mask, pparams, h=H)
    out = jax.block_until_ready(out)

    ref = ref_encoder(x, mask, params)
    assert out.shape == (B, S, D)
    # bf16 matmul operands + approx softmax reciprocal -> loosened (but still tight) tolerance
    assert jnp.allclose(out, ref, atol=2e-2, rtol=2e-2), (
        f"max abs err {jnp.max(jnp.abs(out - ref))}"
    )

    print("KERNEL_OK")
</pallas_src>

<mosaic_0001>
module attributes {stable_mosaic.version = 11 : i64} {
  func.func @encoder_stack_kernel(%arg0: i32, %arg1: i32, %arg2: memref<1x8x32xf32, #tpu.memory_space<vmem>>, %arg3: memref<1x1x8xf32, #tpu.memory_space<vmem>>, %arg4: memref<1x1x32xf32, #tpu.memory_space<vmem>>, %arg5: memref<1x1x32xf32, #tpu.memory_space<vmem>>, %arg6: memref<1x32x96xbf16, #tpu.memory_space<vmem>>, %arg7: memref<1x1x96xf32, #tpu.memory_space<vmem>>, %arg8: memref<1x32x32xbf16, #tpu.memory_space<vmem>>, %arg9: memref<1x1x32xf32, #tpu.memory_space<vmem>>, %arg10: memref<1x1x32xf32, #tpu.memory_space<vmem>>, %arg11: memref<1x1x32xf32, #tpu.memory_space<vmem>>, %arg12: memref<1x32x64xbf16, #tpu.memory_space<vmem>>, %arg13: memref<1x1x64xf32, #tpu.memory_space<vmem>>, %arg14: memref<1x64x32xbf16, #tpu.memory_space<vmem>>, %arg15: memref<1x1x32xf32, #tpu.memory_space<vmem>>, %arg16: memref<1x32xf32, #tpu.memory_space<vmem>>, %arg17: memref<1x32xf32, #tpu.memory_space<vmem>>, %arg18: memref<1x8x32xf32, #tpu.memory_space<vmem>>) attributes {dimension_semantics = [#tpu.dimension_semantics<parallel>, #tpu.dimension_semantics<arbitrary>], iteration_bounds = array<i64: 2, 2>, scalar_prefetch = 0 : i64, scratch_operands = 0 : i64, tpu.core_type = #tpu.core_type<tc>, window_params = [{transform_indices = @transform_0, window_bounds = array<i64: 1, 8, 32>}, {transform_indices = @transform_1, window_bounds = array<i64: 1, 1, 8>}, {transform_indices = @transform_2, window_bounds = array<i64: 1, 1, 32>}, {transform_indices = @transform_3, window_bounds = array<i64: 1, 1, 32>}, {transform_indices = @transform_4, window_bounds = array<i64: 1, 32, 96>}, {transform_indices = @transform_5, window_bounds = array<i64: 1, 1, 96>}, {transform_indices = @transform_6, window_bounds = array<i64: 1, 32, 32>}, {transform_indices = @transform_7, window_bounds = array<i64: 1, 1, 32>}, {transform_indices = @transform_8, window_bounds = array<i64: 1, 1, 32>}, {transform_indices = @transform_9, window_bounds = array<i64: 1, 1, 32>}, {transform_indices = @transform_10, window_bounds = array<i64: 1, 32, 64>}, {transform_indices = @transform_11, window_bounds = array<i64: 1, 1, 64>}, {transform_indices = @transform_12, window_bounds = array<i64: 1, 64, 32>}, {transform_indices = @transform_13, window_bounds = array<i64: 1, 1, 32>}, {pipeline_mode = #tpu.pipeline_mode<synchronous>, transform_indices = @transform_14, window_bounds = array<i64: 1, 32>}, {pipeline_mode = #tpu.pipeline_mode<synchronous>, transform_indices = @transform_15, window_bounds = array<i64: 1, 32>}, {transform_indices = @transform_16, window_bounds = array<i64: 1, 8, 32>}]} {
    %c0_i32 = arith.constant 0 : i32
    %0 = arith.cmpi eq, %arg1, %c0_i32 : i32
    %1 = arith.extui %0 : i1 to i32
    %c0_i32_0 = arith.constant 0 : i32
    %2 = arith.cmpi ne, %1, %c0_i32_0 : i32
    scf.if %2 {
      %c0_76 = arith.constant 0 : index
      %c0_77 = arith.constant 0 : index
      %c0_78 = arith.constant 0 : index
      %182 = vector.load %arg2[%c0_76, %c0_77, %c0_78] : memref<1x8x32xf32, #tpu.memory_space<vmem>>, vector<1x8x32xf32>
      %183 = vector.shape_cast %182 : vector<1x8x32xf32> to vector<8x32xf32>
      %c0_79 = arith.constant 0 : index
      %c0_80 = arith.constant 0 : index
      %c0_81 = arith.constant 0 : index
      %184 = vector.load %arg18[%c0_79, %c0_80, %c0_81] : memref<1x8x32xf32, #tpu.memory_space<vmem>>, vector<1x8x32xf32>
      %185 = vector.shape_cast %184 : vector<1x8x32xf32> to vector<8x32xf32>
      %186 = vector.shape_cast %183 : vector<8x32xf32> to vector<1x8x32xf32>
      tpu.vector_store %arg18[%c0_79, %c0_80, %c0_81], %186 {strides = array<i32>} : memref<1x8x32xf32, #tpu.memory_space<vmem>>, vector<1x8x32xf32>,
    } else {
    }
    %c0 = arith.constant 0 : index
    %c0_1 = arith.constant 0 : index
    %c0_2 = arith.constant 0 : index
    %3 = vector.load %arg18[%c0, %c0_1, %c0_2] : memref<1x8x32xf32, #tpu.memory_space<vmem>>, vector<1x8x32xf32>
    %4 = vector.shape_cast %3 : vector<1x8x32xf32> to vector<8x32xf32>
    %c0_3 = arith.constant 0 : index
    %c0_4 = arith.constant 0 : index
    %c0_5 = arith.constant 0 : index
    %5 = vector.load %arg3[%c0_3, %c0_4, %c0_5] : memref<1x1x8xf32, #tpu.memory_space<vmem>>, vector<1x1x8xf32>
    %6 = vector.shape_cast %5 : vector<1x1x8xf32> to vector<1x8xf32>
    %c0_6 = arith.constant 0 : index
    %c0_7 = arith.constant 0 : index
    %c0_8 = arith.constant 0 : index
    %7 = vector.load %arg4[%c0_6, %c0_7, %c0_8] : memref<1x1x32xf32, #tpu.memory_space<vmem>>, vector<1x1x32xf32>
    %8 = vector.shape_cast %7 : vector<1x1x32xf32> to vector<1x32xf32>
    %c0_9 = arith.constant 0 : index
    %c0_10 = arith.constant 0 : index
    %c0_11 = arith.constant 0 : index
    %9 = vector.load %arg5[%c0_9, %c0_10, %c0_11] : memref<1x1x32xf32, #tpu.memory_space<vmem>>, vector<1x1x32xf32>
    %10 = vector.shape_cast %9 : vector<1x1x32xf32> to vector<1x32xf32>
    %cst = arith.constant dense<0.000000e+00> : vector<8xf32>
    %11 = vector.multi_reduction <add>, %4, %cst [1] : vector<8x32xf32> to vector<8xf32>
    %12 = vector.shape_cast %11 : vector<8xf32> to vector<8x1xf32>
    %cst_12 = arith.constant 3.200000e+01 : f32
    %13 = vector.broadcast %cst_12 : f32 to vector<8x1xf32>
    %14 = arith.divf %12, %13 : vector<8x1xf32>
    %15 = vector.broadcast %14 : vector<8x1xf32> to vector<8x32xf32>
    %16 = arith.subf %4, %15 : vector<8x32xf32>
    %17 = arith.mulf %16, %16 : vector<8x32xf32>
    %cst_13 = arith.constant dense<0.000000e+00> : vector<8xf32>
    %18 = vector.multi_reduction <add>, %17, %cst_13 [1] : vector<8x32xf32> to vector<8xf32>
    %19 = vector.shape_cast %18 : vector<8xf32> to vector<8x1xf32>
    %cst_14 = arith.constant 0.0322580636 : f32
    %20 = vector.broadcast %cst_14 : f32 to vector<8x1xf32>
    %21 = arith.mulf %19, %20 : vector<8x1xf32>
    %22 = math.sqrt %21 : vector<8x1xf32>
    %23 = vector.broadcast %8 : vector<1x32xf32> to vector<8x32xf32>
    %24 = arith.mulf %23, %16 : vector<8x32xf32>
    %cst_15 = arith.constant 9.99999997E-7 : f32
    %25 = vector.broadcast %cst_15 : f32 to vector<8x1xf32>
    %26 = arith.addf %22, %25 : vector<8x1xf32>
    %27 = vector.broadcast %26 : vector<8x1xf32> to vector<8x32xf32>
    %28 = arith.divf %24, %27 : vector<8x32xf32>
    %29 = vector.broadcast %10 : vector<1x32xf32> to vector<8x32xf32>
    %30 = arith.addf %28, %29 : vector<8x32xf32>
    %31 = arith.truncf %30 : vector<8x32xf32> to vector<8x32xbf16>
    %c0_16 = arith.constant 0 : index
    %c0_17 = arith.constant 0 : index
    %c0_18 = arith.constant 0 : index
    %32 = vector.load %arg6[%c0_16, %c0_17, %c0_18] : memref<1x32x96xbf16, #tpu.memory_space<vmem>>, vector<1x32x96xbf16>
    %33 = vector.shape_cast %32 : vector<1x32x96xbf16> to vector<32x96xbf16>
    %cst_19 = arith.constant dense<0.000000e+00> : vector<8x96xf32>
    %34 = tpu.matmul %31, %33, %cst_19 {dimension_numbers = #tpu.dot_dimension_numbers<[1], [0], [0], [1], [0, 0, 1, 1], [], []>} : vector<8x32xbf16>, vector<32x96xbf16>, vector<8x96xf32> -> vector<8x96xf32>
    %c0_20 = arith.constant 0 : index
    %c0_21 = arith.constant 0 : index
    %c0_22 = arith.constant 0 : index
    %35 = vector.load %arg7[%c0_20, %c0_21, %c0_22] : memref<1x1x96xf32, #tpu.memory_space<vmem>>, vector<1x1x96xf32>
    %36 = vector.shape_cast %35 : vector<1x1x96xf32> to vector<1x96xf32>
    %37 = vector.broadcast %36 : vector<1x96xf32> to vector<8x96xf32>
    %38 = arith.addf %34, %37 : vector<8x96xf32>
    %39 = vector.extract_strided_slice %38 {offsets = [0, 0], sizes = [8, 8], strides = [1, 1]} : vector<8x96xf32> to vector<8x8xf32>
    %40 = arith.truncf %39 : vector<8x8xf32> to vector<8x8xbf16>
    %41 = vector.extract_strided_slice %38 {offsets = [0, 32], sizes = [8, 8], strides = [1, 1]} : vector<8x96xf32> to vector<8x8xf32>
    %42 = arith.truncf %41 : vector<8x8xf32> to vector<8x8xbf16>
    %43 = vector.extract_strided_slice %38 {offsets = [0, 64], sizes = [8, 8], strides = [1, 1]} : vector<8x96xf32> to vector<8x8xf32>
    %44 = arith.truncf %43 : vector<8x8xf32> to vector<8x8xbf16>
    %cst_23 = arith.constant dense<0.000000e+00> : vector<8x8xf32>
    %45 = tpu.matmul %40, %42, %cst_23 {dimension_numbers = #tpu.dot_dimension_numbers<[1], [1], [0], [0], [0, 0, 1, 0], [], []>} : vector<8x8xbf16>, vector<8x8xbf16>, vector<8x8xf32> -> vector<8x8xf32>
    %46 = vector.broadcast %6 : vector<1x8xf32> to vector<8x8xf32>
    %47 = arith.addf %45, %46 : vector<8x8xf32>
    %cst_24 = arith.constant dense<0xFF800000> : vector<8xf32>
    %48 = vector.multi_reduction <maximumf>, %47, %cst_24 [1] : vector<8x8xf32> to vector<8xf32>
    %49 = vector.shape_cast %48 : vector<8xf32> to vector<8x1xf32>
    %50 = vector.broadcast %49 : vector<8x1xf32> to vector<8x8xf32>
    %51 = arith.subf %47, %50 : vector<8x8xf32>
    %52 = math.exp %51 : vector<8x8xf32>
    %cst_25 = arith.constant dense<0.000000e+00> : vector<8xf32>
    %53 = vector.multi_reduction <add>, %52, %cst_25 [1] : vector<8x8xf32> to vector<8xf32>
    %54 = vector.shape_cast %53 : vector<8xf32> to vector<8x1xf32>
    %55 = tpu.reciprocal %54 {approx = true} : vector<8x1xf32> -> vector<8x1xf32>
    %56 = vector.broadcast %55 : vector<8x1xf32> to vector<8x8xf32>
    %57 = arith.mulf %52, %56 : vector<8x8xf32>
    %58 = arith.truncf %57 : vector<8x8xf32> to vector<8x8xbf16>
    %cst_26 = arith.constant dense<0.000000e+00> : vector<8x8xf32>
    %59 = tpu.matmul %58, %44, %cst_26 {dimension_numbers = #tpu.dot_dimension_numbers<[1], [0], [0], [1], [0, 0, 1, 1], [], []>} : vector<8x8xbf16>, vector<8x8xbf16>, vector<8x8xf32> -> vector<8x8xf32>
    %60 = vector.extract_strided_slice %38 {offsets = [0, 8], sizes = [8, 8], strides = [1, 1]} : vector<8x96xf32> to vector<8x8xf32>
    %61 = arith.truncf %60 : vector<8x8xf32> to vector<8x8xbf16>
    %62 = vector.extract_strided_slice %38 {offsets = [0, 40], sizes = [8, 8], strides = [1, 1]} : vector<8x96xf32> to vector<8x8xf32>
    %63 = arith.truncf %62 : vector<8x8xf32> to vector<8x8xbf16>
    %64 = vector.extract_strided_slice %38 {offsets = [0, 72], sizes = [8, 8], strides = [1, 1]} : vector<8x96xf32> to vector<8x8xf32>
    %65 = arith.truncf %64 : vector<8x8xf32> to vector<8x8xbf16>
    %cst_27 = arith.constant dense<0.000000e+00> : vector<8x8xf32>
    %66 = tpu.matmul %61, %63, %cst_27 {dimension_numbers = #tpu.dot_dimension_numbers<[1], [1], [0], [0], [0, 0, 1, 0], [], []>} : vector<8x8xbf16>, vector<8x8xbf16>, vector<8x8xf32> -> vector<8x8xf32>
    %67 = vector.broadcast %6 : vector<1x8xf32> to vector<8x8xf32>
    %68 = arith.addf %66, %67 : vector<8x8xf32>
    %cst_28 = arith.constant dense<0xFF800000> : vector<8xf32>
    %69 = vector.multi_reduction <maximumf>, %68, %cst_28 [1] : vector<8x8xf32> to vector<8xf32>
    %70 = vector.shape_cast %69 : vector<8xf32> to vector<8x1xf32>
    %71 = vector.broadcast %70 : vector<8x1xf32> to vector<8x8xf32>
    %72 = arith.subf %68, %71 : vector<8x8xf32>
    %73 = math.exp %72 : vector<8x8xf32>
    %cst_29 = arith.constant dense<0.000000e+00> : vector<8xf32>
    %74 = vector.multi_reduction <add>, %73, %cst_29 [1] : vector<8x8xf32> to vector<8xf32>
    %75 = vector.shape_cast %74 : vector<8xf32> to vector<8x1xf32>
    %76 = tpu.reciprocal %75 {approx = true} : vector<8x1xf32> -> vector<8x1xf32>
    %77 = vector.broadcast %76 : vector<8x1xf32> to vector<8x8xf32>
    %78 = arith.mulf %73, %77 : vector<8x8xf32>
    %79 = arith.truncf %78 : vector<8x8xf32> to vector<8x8xbf16>
    %cst_30 = arith.constant dense<0.000000e+00> : vector<8x8xf32>
    %80 = tpu.matmul %79, %65, %cst_30 {dimension_numbers = #tpu.dot_dimension_numbers<[1], [0], [0], [1], [0, 0, 1, 1], [], []>} : vector<8x8xbf16>, vector<8x8xbf16>, vector<8x8xf32> -> vector<8x8xf32>
    %81 = vector.extract_strided_slice %38 {offsets = [0, 16], sizes = [8, 8], strides = [1, 1]} : vector<8x96xf32> to vector<8x8xf32>
    %82 = arith.truncf %81 : vector<8x8xf32> to vector<8x8xbf16>
    %83 = vector.extract_strided_slice %38 {offsets = [0, 48], sizes = [8, 8], strides = [1, 1]} : vector<8x96xf32> to vector<8x8xf32>
    %84 = arith.truncf %83 : vector<8x8xf32> to vector<8x8xbf16>
    %85 = vector.extract_strided_slice %38 {offsets = [0, 80], sizes = [8, 8], strides = [1, 1]} : vector<8x96xf32> to vector<8x8xf32>
    %86 = arith.truncf %85 : vector<8x8xf32> to vector<8x8xbf16>
    %cst_31 = arith.constant dense<0.000000e+00> : vector<8x8xf32>
    %87 = tpu.matmul %82, %84, %cst_31 {dimension_numbers = #tpu.dot_dimension_numbers<[1], [1], [0], [0], [0, 0, 1, 0], [], []>} : vector<8x8xbf16>, vector<8x8xbf16>, vector<8x8xf32> -> vector<8x8xf32>
    %88 = vector.broadcast %6 : vector<1x8xf32> to vector<8x8xf32>
    %89 = arith.addf %87, %88 : vector<8x8xf32>
    %cst_32 = arith.constant dense<0xFF800000> : vector<8xf32>
    %90 = vector.multi_reduction <maximumf>, %89, %cst_32 [1] : vector<8x8xf32> to vector<8xf32>
    %91 = vector.shape_cast %90 : vector<8xf32> to vector<8x1xf32>
    %92 = vector.broadcast %91 : vector<8x1xf32> to vector<8x8xf32>
    %93 = arith.subf %89, %92 : vector<8x8xf32>
    %94 = math.exp %93 : vector<8x8xf32>
    %cst_33 = arith.constant dense<0.000000e+00> : vector<8xf32>
    %95 = vector.multi_reduction <add>, %94, %cst_33 [1] : vector<8x8xf32> to vector<8xf32>
    %96 = vector.shape_cast %95 : vector<8xf32> to vector<8x1xf32>
    %97 = tpu.reciprocal %96 {approx = true} : vector<8x1xf32> -> vector<8x1xf32>
    %98 = vector.broadcast %97 : vector<8x1xf32> to vector<8x8xf32>
    %99 = arith.mulf %94, %98 : vector<8x8xf32>
    %100 = arith.truncf %99 : vector<8x8xf32> to vector<8x8xbf16>
    %cst_34 = arith.constant dense<0.000000e+00> : vector<8x8xf32>
    %101 = tpu.matmul %100, %86, %cst_34 {dimension_numbers = #tpu.dot_dimension_numbers<[1], [0], [0], [1], [0, 0, 1, 1], [], []>} : vector<8x8xbf16>, vector<8x8xbf16>, vector<8x8xf32> -> vector<8x8xf32>
    %102 = vector.extract_strided_slice %38 {offsets = [0, 24], sizes = [8, 8], strides = [1, 1]} : vector<8x96xf32> to vector<8x8xf32>
    %103 = arith.truncf %102 : vector<8x8xf32> to vector<8x8xbf16>
    %104 = vector.extract_strided_slice %38 {offsets = [0, 56], sizes = [8, 8], strides = [1, 1]} : vector<8x96xf32> to vector<8x8xf32>
    %105 = arith.truncf %104 : vector<8x8xf32> to vector<8x8xbf16>
    %106 = vector.extract_strided_slice %38 {offsets = [0, 88], sizes = [8, 8], strides = [1, 1]} : vector<8x96xf32> to vector<8x8xf32>
    %107 = arith.truncf %106 : vector<8x8xf32> to vector<8x8xbf16>
    %cst_35 = arith.constant dense<0.000000e+00> : vector<8x8xf32>
    %108 = tpu.matmul %103, %105, %cst_35 {dimension_numbers = #tpu.dot_dimension_numbers<[1], [1], [0], [0], [0, 0, 1, 0], [], []>} : vector<8x8xbf16>, vector<8x8xbf16>, vector<8x8xf32> -> vector<8x8xf32>
    %109 = vector.broadcast %6 : vector<1x8xf32> to vector<8x8xf32>
    %110 = arith.addf %108, %109 : vector<8x8xf32>
    %cst_36 = arith.constant dense<0xFF800000> : vector<8xf32>
    %111 = vector.multi_reduction <maximumf>, %110, %cst_36 [1] : vector<8x8xf32> to vector<8xf32>
    %112 = vector.shape_cast %111 : vector<8xf32> to vector<8x1xf32>
    %113 = vector.broadcast %112 : vector<8x1xf32> to vector<8x8xf32>
    %114 = arith.subf %110, %113 : vector<8x8xf32>
    %115 = math.exp %114 : vector<8x8xf32>
    %cst_37 = arith.constant dense<0.000000e+00> : vector<8xf32>
    %116 = vector.multi_reduction <add>, %115, %cst_37 [1] : vector<8x8xf32> to vector<8xf32>
    %117 = vector.shape_cast %116 : vector<8xf32> to vector<8x1xf32>
    %118 = tpu.reciprocal %117 {approx = true} : vector<8x1xf32> -> vector<8x1xf32>
    %119 = vector.broadcast %118 : vector<8x1xf32> to vector<8x8xf32>
    %120 = arith.mulf %115, %119 : vector<8x8xf32>
    %121 = arith.truncf %120 : vector<8x8xf32> to vector<8x8xbf16>
    %cst_38 = arith.constant dense<0.000000e+00> : vector<8x8xf32>
    %122 = tpu.matmul %121, %107, %cst_38 {dimension_numbers = #tpu.dot_dimension_numbers<[1], [0], [0], [1], [0, 0, 1, 1], [], []>} : vector<8x8xbf16>, vector<8x8xbf16>, vector<8x8xf32> -> vector<8x8xf32>
    %123 = tpu.concatenate %59, %80, %101, %122 in 1 : vector<8x8xf32>, vector<8x8xf32>, vector<8x8xf32>, vector<8x8xf32> -> vector<8x32xf32>
    %124 = arith.truncf %123 : vector<8x32xf32> to vector<8x32xbf16>
    %c0_39 = arith.constant 0 : index
    %c0_40 = arith.constant 0 : index
    %c0_41 = arith.constant 0 : index
    %125 = vector.load %arg8[%c0_39, %c0_40, %c0_41] : memref<1x32x32xbf16, #tpu.memory_space<vmem>>, vector<1x32x32xbf16>
    %126 = vector.shape_cast %125 : vector<1x32x32xbf16> to vector<32x32xbf16>
    %cst_42 = arith.constant dense<0.000000e+00> : vector<8x32xf32>
    %127 = tpu.matmul %124, %126, %cst_42 {dimension_numbers = #tpu.dot_dimension_numbers<[1], [0], [0], [1], [0, 0, 1, 1], [], []>} : vector<8x32xbf16>, vector<32x32xbf16>, vector<8x32xf32> -> vector<8x32xf32>
    %c0_43 = arith.constant 0 : index
    %c0_44 = arith.constant 0 : index
    %c0_45 = arith.constant 0 : index
    %128 = vector.load %arg9[%c0_43, %c0_44, %c0_45] : memref<1x1x32xf32, #tpu.memory_space<vmem>>, vector<1x1x32xf32>
    %129 = vector.shape_cast %128 : vector<1x1x32xf32> to vector<1x32xf32>
    %130 = vector.broadcast %129 : vector<1x32xf32> to vector<8x32xf32>
    %131 = arith.addf %127, %130 : vector<8x32xf32>
    %132 = arith.addf %4, %131 : vector<8x32xf32>
    %c0_46 = arith.constant 0 : index
    %c0_47 = arith.constant 0 : index
    %c0_48 = arith.constant 0 : index
    %133 = vector.load %arg10[%c0_46, %c0_47, %c0_48] : memref<1x1x32xf32, #tpu.memory_space<vmem>>, vector<1x1x32xf32>
    %134 = vector.shape_cast %133 : vector<1x1x32xf32> to vector<1x32xf32>
    %c0_49 = arith.constant 0 : index
    %c0_50 = arith.constant 0 : index
    %c0_51 = arith.constant 0 : index
    %135 = vector.load %arg11[%c0_49, %c0_50, %c0_51] : memref<1x1x32xf32, #tpu.memory_space<vmem>>, vector<1x1x32xf32>
    %136 = vector.shape_cast %135 : vector<1x1x32xf32> to vector<1x32xf32>
    %cst_52 = arith.constant dense<0.000000e+00> : vector<8xf32>
    %137 = vector.multi_reduction <add>, %132, %cst_52 [1] : vector<8x32xf32> to vector<8xf32>
    %138 = vector.shape_cast %137 : vector<8xf32> to vector<8x1xf32>
    %cst_53 = arith.constant 3.200000e+01 : f32
    %139 = vector.broadcast %cst_53 : f32 to vector<8x1xf32>
    %140 = arith.divf %138, %139 : vector<8x1xf32>
    %141 = vector.broadcast %140 : vector<8x1xf32> to vector<8x32xf32>
    %142 = arith.subf %132, %141 : vector<8x32xf32>
    %143 = arith.mulf %142, %142 : vector<8x32xf32>
    %cst_54 = arith.constant dense<0.000000e+00> : vector<8xf32>
    %144 = vector.multi_reduction <add>, %143, %cst_54 [1] : vector<8x32xf32> to vector<8xf32>
    %145 = vector.shape_cast %144 : vector<8xf32> to vector<8x1xf32>
    %cst_55 = arith.constant 0.0322580636 : f32
    %146 = vector.broadcast %cst_55 : f32 to vector<8x1xf32>
    %147 = arith.mulf %145, %146 : vector<8x1xf32>
    %148 = math.sqrt %147 : vector<8x1xf32>
    %149 = vector.broadcast %134 : vector<1x32xf32> to vector<8x32xf32>
    %150 = arith.mulf %149, %142 : vector<8x32xf32>
    %cst_56 = arith.constant 9.99999997E-7 : f32
    %151 = vector.broadcast %cst_56 : f32 to vector<8x1xf32>
    %152 = arith.addf %148, %151 : vector<8x1xf32>
    %153 = vector.broadcast %152 : vector<8x1xf32> to vector<8x32xf32>
    %154 = arith.divf %150, %153 : vector<8x32xf32>
    %155 = vector.broadcast %136 : vector<1x32xf32> to vector<8x32xf32>
    %156 = arith.addf %154, %155 : vector<8x32xf32>
    %157 = arith.truncf %156 : vector<8x32xf32> to vector<8x32xbf16>
    %c0_57 = arith.constant 0 : index
    %c0_58 = arith.constant 0 : index
    %c0_59 = arith.constant 0 : index
    %158 = vector.load %arg12[%c0_57, %c0_58, %c0_59] : memref<1x32x64xbf16, #tpu.memory_space<vmem>>, vector<1x32x64xbf16>
    %159 = vector.shape_cast %158 : vector<1x32x64xbf16> to vector<32x64xbf16>
    %cst_60 = arith.constant dense<0.000000e+00> : vector<8x64xf32>
    %160 = tpu.matmul %157, %159, %cst_60 {dimension_numbers = #tpu.dot_dimension_numbers<[1], [0], [0], [1], [0, 0, 1, 1], [], []>} : vector<8x32xbf16>, vector<32x64xbf16>, vector<8x64xf32> -> vector<8x64xf32>
    %c0_61 = arith.constant 0 : index
    %c0_62 = arith.constant 0 : index
    %c0_63 = arith.constant 0 : index
    %161 = vector.load %arg13[%c0_61, %c0_62, %c0_63] : memref<1x1x64xf32, #tpu.memory_space<vmem>>, vector<1x1x64xf32>
    %162 = vector.shape_cast %161 : vector<1x1x64xf32> to vector<1x64xf32>
    %163 = vector.broadcast %162 : vector<1x64xf32> to vector<8x64xf32>
    %164 = arith.addf %160, %163 : vector<8x64xf32>
    %cst_64 = arith.constant 0.000000e+00 : f32
    %165 = vector.broadcast %cst_64 : f32 to vector<8x64xf32>
    %166 = arith.maximumf %164, %165 : vector<8x64xf32>
    %167 = arith.truncf %166 : vector<8x64xf32> to vector<8x64xbf16>
    %c0_65 = arith.constant 0 : index
    %c0_66 = arith.constant 0 : index
    %c0_67 = arith.constant 0 : index
    %168 = vector.load %arg14[%c0_65, %c0_66, %c0_67] : memref<1x64x32xbf16, #tpu.memory_space<vmem>>, vector<1x64x32xbf16>
    %169 = vector.shape_cast %168 : vector<1x64x32xbf16> to vector<64x32xbf16>
    %cst_68 = arith.constant dense<0.000000e+00> : vector<8x32xf32>
    %170 = tpu.matmul %167, %169, %cst_68 {dimension_numbers = #tpu.dot_dimension_numbers<[1], [0], [0], [1], [0, 0, 1, 1], [], []>} : vector<8x64xbf16>, vector<64x32xbf16>, vector<8x32xf32> -> vector<8x32xf32>
    %c0_69 = arith.constant 0 : index
    %c0_70 = arith.constant 0 : index
    %c0_71 = arith.constant 0 : index
    %171 = vector.load %arg15[%c0_69, %c0_70, %c0_71] : memref<1x1x32xf32, #tpu.memory_space<vmem>>, vector<1x1x32xf32>
    %172 = vector.shape_cast %171 : vector<1x1x32xf32> to vector<1x32xf32>
    %173 = vector.broadcast %172 : vector<1x32xf32> to vector<8x32xf32>
    %174 = arith.addf %170, %173 : vector<8x32xf32>
    %175 = arith.addf %132, %174 : vector<8x32xf32>
    %c0_72 = arith.constant 0 : index
    %c0_73 = arith.constant 0 : index
    %c0_74 = arith.constant 0 : index
    %176 = vector.load %arg18[%c0_72, %c0_73, %c0_74] : memref<1x8x32xf32, #tpu.memory_space<vmem>>, vector<1x8x32xf32>
    %177 = vector.shape_cast %176 : vector<1x8x32xf32> to vector<8x32xf32>
    %178 = vector.shape_cast %175 : vector<8x32xf32> to vector<1x8x32xf32>
    tpu.vector_store %arg18[%c0_72, %c0_73, %c0_74], %178 {strides = array<i32>} : memref<1x8x32xf32, #tpu.memory_space<vmem>>, vector<1x8x32xf32>,
    %c1_i32 = arith.constant 1 : i32
    %179 = arith.cmpi eq, %arg1, %c1_i32 : i32
    %180 = arith.extui %179 : i1 to i32
    %c0_i32_75 = arith.constant 0 : i32
    %181 = arith.cmpi ne, %180, %c0_i32_75 : i32
    scf.if %181 {
      %c0_76 = arith.constant 0 : index
      %c0_77 = arith.constant 0 : index
      %182 = vector.load %arg16[%c0_76, %c0_77] : memref<1x32xf32, #tpu.memory_space<vmem>>, vector<1x32xf32>
      %c0_78 = arith.constant 0 : index
      %c0_79 = arith.constant 0 : index
      %183 = vector.load %arg17[%c0_78, %c0_79] : memref<1x32xf32, #tpu.memory_space<vmem>>, vector<1x32xf32>
      %cst_80 = arith.constant dense<0.000000e+00> : vector<8xf32>
      %184 = vector.multi_reduction <add>, %175, %cst_80 [1] : vector<8x32xf32> to vector<8xf32>
      %185 = vector.shape_cast %184 : vector<8xf32> to vector<8x1xf32>
      %cst_81 = arith.constant 3.200000e+01 : f32
      %186 = vector.broadcast %cst_81 : f32 to vector<8x1xf32>
      %187 = arith.divf %185, %186 : vector<8x1xf32>
      %188 = vector.broadcast %187 : vector<8x1xf32> to vector<8x32xf32>
      %189 = arith.subf %175, %188 : vector<8x32xf32>
      %190 = arith.mulf %189, %189 : vector<8x32xf32>
      %cst_82 = arith.constant dense<0.000000e+00> : vector<8xf32>
      %191 = vector.multi_reduction <add>, %190, %cst_82 [1] : vector<8x32xf32> to vector<8xf32>
      %192 = vector.shape_cast %191 : vector<8xf32> to vector<8x1xf32>
      %cst_83 = arith.constant 0.0322580636 : f32
      %193 = vector.broadcast %cst_83 : f32 to vector<8x1xf32>
      %194 = arith.mulf %192, %193 : vector<8x1xf32>
      %195 = math.sqrt %194 : vector<8x1xf32>
      %196 = vector.broadcast %182 : vector<1x32xf32> to vector<8x32xf32>
      %197 = arith.mulf %196, %189 : vector<8x32xf32>
      %cst_84 = arith.constant 9.99999997E-7 : f32
      %198 = vector.broadcast %cst_84 : f32 to vector<8x1xf32>
      %199 = arith.addf %195, %198 : vector<8x1xf32>
      %200 = vector.broadcast %199 : vector<8x1xf32> to vector<8x32xf32>
      %201 = arith.divf %197, %200 : vector<8x32xf32>
      %202 = vector.broadcast %183 : vector<1x32xf32> to vector<8x32xf32>
      %203 = arith.addf %201, %202 : vector<8x32xf32>
      %c0_85 = arith.constant 0 : index
      %c0_86 = arith.constant 0 : index
      %c0_87 = arith.constant 0 : index
      %204 = vector.load %arg18[%c0_85, %c0_86, %c0_87] : memref<1x8x32xf32, #tpu.memory_space<vmem>>, vector<1x8x32xf32>
      %205 = vector.shape_cast %204 : vector<1x8x32xf32> to vector<8x32xf32>
      %206 = vector.shape_cast %203 : vector<8x32xf32> to vector<1x8x32xf32>
      tpu.vector_store %arg18[%c0_85, %c0_86, %c0_87], %206 {strides = array<i32>} : memref<1x8x32xf32, #tpu.memory_space<vmem>>, vector<1x8x32xf32>,
    } else {
    }
    return
  }
  func.func @transform_0(%arg0: i32, %arg1: i32) -> (i32, i32, i32) {
    %c0_i32 = arith.constant 0 : i32
    %c0_i32_0 = arith.constant 0 : i32
    %c0_i32_1 = arith.constant 0 : i32
    return %arg0, %c0_i32, %c0_i32_0 : i32, i32, i32
  }
  func.func @transform_1(%arg0: i32, %arg1: i32) -> (i32, i32, i32) {
    %c0_i32 = arith.constant 0 : i32
    %c0_i32_0 = arith.constant 0 : i32
    %c0_i32_1 = arith.constant 0 : i32
    return %arg0, %c0_i32, %c0_i32_0 : i32, i32, i32
  }
  func.func @transform_2(%arg0: i32, %arg1: i32) -> (i32, i32, i32) {
    %c0_i32 = arith.constant 0 : i32
    %c0_i32_0 = arith.constant 0 : i32
    %c0_i32_1 = arith.constant 0 : i32
    return %arg1, %c0_i32, %c0_i32_0 : i32, i32, i32
  }
  func.func @transform_3(%arg0: i32, %arg1: i32) -> (i32, i32, i32) {
    %c0_i32 = arith.constant 0 : i32
    %c0_i32_0 = arith.constant 0 : i32
    %c0_i32_1 = arith.constant 0 : i32
    return %arg1, %c0_i32, %c0_i32_0 : i32, i32, i32
  }
  func.func @transform_4(%arg0: i32, %arg1: i32) -> (i32, i32, i32) {
    %c0_i32 = arith.constant 0 : i32
    %c0_i32_0 = arith.constant 0 : i32
    %c0_i32_1 = arith.constant 0 : i32
    return %arg1, %c0_i32, %c0_i32_0 : i32, i32, i32
  }
  func.func @transform_5(%arg0: i32, %arg1: i32) -> (i32, i32, i32) {
    %c0_i32 = arith.constant 0 : i32
    %c0_i32_0 = arith.constant 0 : i32
    %c0_i32_1 = arith.constant 0 : i32
    return %arg1, %c0_i32, %c0_i32_0 : i32, i32, i32
  }
  func.func @transform_6(%arg0: i32, %arg1: i32) -> (i32, i32, i32) {
    %c0_i32 = arith.constant 0 : i32
    %c0_i32_0 = arith.constant 0 : i32
    %c0_i32_1 = arith.constant 0 : i32
    return %arg1, %c0_i32, %c0_i32_0 : i32, i32, i32
  }
  func.func @transform_7(%arg0: i32, %arg1: i32) -> (i32, i32, i32) {
    %c0_i32 = arith.constant 0 : i32
    %c0_i32_0 = arith.constant 0 : i32
    %c0_i32_1 = arith.constant 0 : i32
    return %arg1, %c0_i32, %c0_i32_0 : i32, i32, i32
  }
  func.func @transform_8(%arg0: i32, %arg1: i32) -> (i32, i32, i32) {
    %c0_i32 = arith.constant 0 : i32
    %c0_i32_0 = arith.constant 0 : i32
    %c0_i32_1 = arith.constant 0 : i32
    return %arg1, %c0_i32, %c0_i32_0 : i32, i32, i32
  }
  func.func @transform_9(%arg0: i32, %arg1: i32) -> (i32, i32, i32) {
    %c0_i32 = arith.constant 0 : i32
    %c0_i32_0 = arith.constant 0 : i32
    %c0_i32_1 = arith.constant 0 : i32
    return %arg1, %c0_i32, %c0_i32_0 : i32, i32, i32
  }
  func.func @transform_10(%arg0: i32, %arg1: i32) -> (i32, i32, i32) {
    %c0_i32 = arith.constant 0 : i32
    %c0_i32_0 = arith.constant 0 : i32
    %c0_i32_1 = arith.constant 0 : i32
    return %arg1, %c0_i32, %c0_i32_0 : i32, i32, i32
  }
  func.func @transform_11(%arg0: i32, %arg1: i32) -> (i32, i32, i32) {
    %c0_i32 = arith.constant 0 : i32
    %c0_i32_0 = arith.constant 0 : i32
    %c0_i32_1 = arith.constant 0 : i32
    return %arg1, %c0_i32, %c0_i32_0 : i32, i32, i32
  }
  func.func @transform_12(%arg0: i32, %arg1: i32) -> (i32, i32, i32) {
    %c0_i32 = arith.constant 0 : i32
    %c0_i32_0 = arith.constant 0 : i32
    %c0_i32_1 = arith.constant 0 : i32
    return %arg1, %c0_i32, %c0_i32_0 : i32, i32, i32
  }
  func.func @transform_13(%arg0: i32, %arg1: i32) -> (i32, i32, i32) {
    %c0_i32 = arith.constant 0 : i32
    %c0_i32_0 = arith.constant 0 : i32
    %c0_i32_1 = arith.constant 0 : i32
    return %arg1, %c0_i32, %c0_i32_0 : i32, i32, i32
  }
  func.func @transform_14(%arg0: i32, %arg1: i32) -> (i32, i32) {
    %c0_i32 = arith.constant 0 : i32
    %c0_i32_0 = arith.constant 0 : i32
    %c0_i32_1 = arith.constant 0 : i32
    return %c0_i32, %c0_i32_0 : i32, i32
  }
  func.func @transform_15(%arg0: i32, %arg1: i32) -> (i32, i32) {
    %c0_i32 = arith.constant 0 : i32
    %c0_i32_0 = arith.constant 0 : i32
    %c0_i32_1 = arith.constant 0 : i32
    return %c0_i32, %c0_i32_0 : i32, i32
  }
  func.func @transform_16(%arg0: i32, %arg1: i32) -> (i32, i32, i32) {
    %c0_i32 = arith.constant 0 : i32
    %c0_i32_0 = arith.constant 0 : i32
    %c0_i32_1 = arith.constant 0 : i32
    return %arg0, %c0_i32, %c0_i32_0 : i32, i32, i32
  }
}

</mosaic_0001>

<bundles_post_ra>
// kernel: encoder_forward.1
= control target key start
LH: loop header
LB: loop body
LE: loop exit
PB: predicated region body
PF: predicated region fallthrough
CT: control target
= control target key end

     0   :  { %s2708_s0 = inlined_call_operand.hbm [shape: f32[2,8,32], index: 0, kind: input, shape index: {}, may-alias: {0,16}]   ;;  %s2709_s1 = inlined_call_operand.vmem [shape: f32[2,1,8], index: 1, kind: input, shape index: {}]   ;;  %s2710_s2 = inlined_call_operand.vmem [shape: f32[2,1,32], index: 2, kind: input, shape index: {}]   ;;  %s2711_s3 = inlined_call_operand.vmem [shape: f32[2,1,32], index: 3, kind: input, shape index: {}]   ;;  %s2712_s4 = inlined_call_operand.vmem [shape: bf16[2,32,96], index: 4, kind: input, shape index: {}]   ;;  %s2713_s5 = inlined_call_operand.vmem [shape: f32[2,1,96], index: 5, kind: input, shape index: {}]   ;;  %s2714_s6 = inlined_call_operand.vmem [shape: bf16[2,32,32], index: 6, kind: input, shape index: {}]   ;;  %s2715_s7 = inlined_call_operand.vmem [shape: f32[2,1,32], index: 7, kind: input, shape index: {}]   ;;  %s2716_s8 = inlined_call_operand.vmem [shape: f32[2,1,32], index: 8, kind: input, shape index: {}]   ;;  %s2717_s9 = inlined_call_operand.vmem [shape: f32[2,1,32], index: 9, kind: input, shape index: {}]   ;;  %s2718_s10 = inlined_call_operand.vmem [shape: bf16[2,32,64], index: 10, kind: input, shape index: {}]   ;;  %s2719_s11 = inlined_call_operand.vmem [shape: f32[2,1,64], index: 11, kind: input, shape index: {}]   ;;  %s2720_s12 = inlined_call_operand.vmem [shape: bf16[2,64,32], index: 12, kind: input, shape index: {}]   ;;  %s2721_s13 = inlined_call_operand.hbm [shape: f32[2,1,32], index: 13, kind: input, shape index: {}]   ;;  %s2722_s14 = inlined_call_operand.hbm [shape: f32[1,32], index: 14, kind: input, shape index: {}]   ;;  %s2723_s15 = inlined_call_operand.hbm [shape: f32[1,32], index: 15, kind: input, shape index: {}]   ;;  %s2724_s16 = inlined_call_operand.hbm [shape: f32[2,8,32], index: 16, kind: output, shape index: {}, may-alias: {0,16}]  }
   0x1   :  { %2742 = sst [smem:[#allocation31_spill]] %s2708_s0 }
   0x2   :  { %2743 = sst [smem:[#allocation32_spill]] %s2710_s2 }
   0x3   :  { %2744 = sst [smem:[#allocation33_spill]] %s2711_s3 }
   0x4   :  { %2745 = sst [smem:[#allocation34_spill]] %s2712_s4 }
   0x5   :  { %2746 = sst [smem:[#allocation35_spill]] %s2713_s5 }
   0x6   :  { %2747 = sst [smem:[#allocation36_spill]] %s2714_s6 }
   0x7   :  { %2748 = sst [smem:[#allocation37_spill]] %s2715_s7 }
   0x8   :  { %2749 = sst [smem:[#allocation38_spill]] %s2716_s8 }
   0x9   :  { %2750 = sst [smem:[#allocation39_spill]] %s2717_s9 }
   0xa   :  { %2751 = sst [smem:[#allocation40_spill]] %s2718_s10 }
   0xb   :  { %2752 = sst [smem:[#allocation41_spill]] %s2719_s11 }
   0xc   :  { %2753 = sst [smem:[#allocation42_spill]] %s2720_s12 }
   0xd   :  { %2754 = sst [smem:[#allocation43_spill]] %s2721_s13 }
   0xe   :  { %2755 = sst [smem:[#allocation44_spill]] %s2722_s14 }
   0xf   :  { %2756 = sst [smem:[#allocation45_spill]] %s2723_s15 }
  0x10   :  { %2757 = sst [smem:[#allocation46_spill]] %s2724_s16 }
  0x11   :  { %21 = vsyncpa [#allocation3], 0 }
  0x12   :  { %23 = vsyncpa [#allocation3 + $0x1], 0 }
  0x13   :  { %24 = vsyncpa [#allocation6], 0 }
  0x14   :  { %26 = vsyncpa [#allocation6 + $0x1], 0 }
  0x15   :  { %27 = vsyncpa [#allocation9], 0 }
  0x16   :  { %28 = vsyncpa [#allocation4], 0 }
  0x17   :  { %30 = vsyncpa [#allocation4 + $0x1], 0  ;;  %s2279_s21 = smov 0   ;;  %s2281_s22 = smov 0  }
  0x18   :  { %s2283_s23 = smov 0   ;;  %s2285_s24 = smov 0  }
  0x19   :  { %s2287_s25 = smov 0   ;;  %s2289_s26 = smov 0  }
  0x1a   :  { %s2291_s27 = smov 0   ;;  %s2293_s28 = smov 0  }
  0x1b   :  { %s2295_s29 = smov 0   ;;  %s2297_s30 = smov 0  }
  0x1c   :  { %s2299_s0 = smov 0  }
  0x1d LB: > { %2758 = sst [smem:[#allocation16_spill]] %s2139_s22  ;;  %s2333_s17 = sadd.s32 4294967295, %s2175_s0   ;;  %s2175_s0 = sphi %s2299_s0, %s36_s0   ;;  %s2171_s30 = sphi %s2297_s30, %s2823_s30   ;;  %s2167_s29 = sphi %s2295_s29, %s2822_s29   ;;  %s2163_s28 = sphi %s2293_s28, %s2821_s28   ;;  %s2159_s27 = sphi %s2291_s27, %s2820_s27   ;;  %s2155_s26 = sphi %s2289_s26, %s2819_s26   ;;  %s2151_s25 = sphi %s2287_s25, %s2818_s25   ;;  %s2147_s24 = sphi %s2285_s24, %s2817_s24   ;;  %s2143_s23 = sphi %s2283_s23, %s2816_s23   ;;  %s2139_s22 = sphi %s2281_s22, %s2815_s22   ;;  %s2135_s21 = sphi %s2279_s21, %s2814_s21  }
  0x1e   : > { %2759 = sst [smem:[#allocation17_spill]] %s2143_s23  ;;  %p406_p0 = scmp.ne.s32.totalorder %s2139_s22, %s2135_s21 }
  0x1f   : > { %2760 = sst [smem:[#allocation18_spill]] %s2147_s24  ;;  %p69_p1 = scmp.eq.s32.totalorder %s2333_s17, 0 }
  0x20   : > { %2761 = sst [smem:[#allocation19_spill]] %s2151_s25  ;;  %p472_p2 = scmp.eq.s32.totalorder %s2333_s17, 3 }
  0x21   : > { %2762 = sst [smem:[#allocation20_spill]] %s2155_s26  ;;  %p1646_p3 = scmp.ge.s32.totalorder %s2175_s0, 1 }
  0x22   : > { %2763 = sst [smem:[#allocation21_spill]] %s2163_s28  ;;  %p485_p4 = scmp.lt.s32.totalorder %s2175_s0, 5 }
  0x23   : > { %2764 = sst [smem:[#allocation22_spill]] %s2167_s29  ;;  %p2342_p5 = por %p406_p0, %p69_p1 }
  0x24   : > { %2765 = sst [smem:[#allocation23_spill]] %s2171_s30  ;;  %p2346_p6 = pnand %p1646_p3, %p485_p4 }
  0x25   : > { %2766 = sst [smem:[#allocation24_spill]] %s2175_s0  ;;  %s2177_s12 = smov [#allocation7]  }
  0x26   : > { %s2769_s14 = sld [smem:[#allocation44_spill]]  ;;  %p1751_p7 = pneg %p2346_p6 }
  0x27   : > { %s499_s11 = sshll.u32 %s2177_s12, 4  ;;  %s2770_s15 = sld [smem:[#allocation45_spill]]  ;;  %s500_s11 = int_to_ptr.vmem [resolvable:$true] %s499_s11 }
  0x28   : > { %p1752_p8 = pnand %p1751_p7, %p69_p1  ;;  %s1645_s12 = sadd.s32 4294967294, %s2175_s0  }
  0x29   : > { %s48_s8 = sadd.s32 1, %s2171_s30  ;;  %p62_p9 = scmp.ne.s32.totalorder %s2155_s26, %s2151_s25 }
  0x2a   : > { %p63_p10 = scmp.eq.s32.totalorder %s2175_s0, 0  ;;  %p68_p11 = scmp.ne.s32.totalorder %s2151_s25, %s2147_s24 }
  0x2b   : > { %p478_p12 = scmp.eq.s32.totalorder %s1645_s12, 3  ;;  %p2375_p0 = por %p472_p2, %p62_p9 }
  0x2c   : > { %s497_s21 = sshll.u32 %s2769_s14, 4  ;;  %s2178_s14 = smov [#allocation8]   ;;  %s498_s21 = int_to_ptr.hbm [resolvable:$true] %s497_s21 }
  0x2d   : > { %s509_s20 = sshll.u32 %s2770_s15, 4  ;;  %s511_s9 = sshll.u32 %s2178_s14, 4  ;;  %s510_s20 = int_to_ptr.hbm [resolvable:$true] %s509_s20  ;;  %s512_s9 = int_to_ptr.vmem [resolvable:$true] %s511_s9 }
  0x2e   : > { %1754 = dma.hbm_to_vmem [thread:$0]  (!%p1752_p8), %s498_s21, 16, %s500_s11, [#allocation6]  }
  0x2f   : > { %1757 = dma.hbm_to_vmem [thread:$0]  (!%p1752_p8), %s510_s20, 16, %s512_s9, [#allocation9]  }
  0x30   : > { %p2369_p13 = por %p63_p10, %p62_p9  ;;  %p2381_p3 = por %p69_p1, %p68_p11 }
  0x31   : > { %s2772_s14 = scalar_select %p2375_p0, 1, 0 }
  0x32   : > { %p2385_p4 = por %p478_p12, %p68_p11  ;;  %p1771_p7 = scmp.lt.s32.totalorder %s2175_s0, 4 }
  0x33   : > { %2773 = sst [smem:[#allocation25_spill]] %s2772_s14  ;;  %s522_s21 = sand.u32 1, %s2155_s26  }
  0x34   : > { %s2775_s11 = scalar_select %p2385_p4, 1, 0 }
  0x35   : > { %s1650_s16 = sshll.u32 %s522_s21, 3  ;;  %s1651_s20 = sshll.u32 %s2171_s30, 3 }
  0x36   : > { %2776 = sst [smem:[#allocation26_spill]] %s2775_s11  ;;  %s526_s7 = scalar_lea.vmem [#allocation2], %s1650_s16 }
  0x37   : > { %s2777_s24 = sld [smem:[#allocation31_spill]]  ;;  %s534_s6 = sshll.u32 %s526_s7, 4  ;;  %s535_s6 = int_to_ptr.vmem [resolvable:$true] %s534_s6 }
  0x38   : > { %p1759_p2 = pnand %p1771_p7, %p2369_p13  ;;  %s523_s11 = scalar_lea.sflag [#allocation3], %s522_s21 }
  0x39   : > { %s45_s5 = sadd.s32 1, %s2167_s29  ;;  %s55_s15 = sadd.s32 1, %s2155_s26 }
  0x3a   : > { %p46_p8 = scmp.ge.s32.totalorder %s45_s5, 2  ;;  %p400_p9 = scmp.ne.s32.totalorder %s2143_s23, %s2139_s22 }
  0x3b   : > { %s621_s10 = sand.u32 1, %s2175_s0   ;;  %s2782_s13 = sld [smem:[#allocation43_spill]] }
  0x3c   : > { %s2825_s5 = smov (%p46_p8, %s45_s5), 0  ;;  %s2827_s8 = smov (!%p46_p8, %s48_s8), %s2171_s30 }
  0x3d   : > { %s530_s14 = scalar_lea.hbm %s2777_s24, %s1651_s20  ;;  %s393_s24 = sadd.s32 1, %s2143_s23 }
  0x3e   : > { %s532_s4 = sshll.u32 %s530_s14, 4  ;;  %2778 = sst [smem:[#allocation27_spill]] %s2825_s5  ;;  %s533_s4 = int_to_ptr.hbm [resolvable:$true] %s532_s4 }
  0x3f   : > { %1761 = dma.hbm_to_vmem [thread:$0]  (!%p1759_p2), %s533_s4, 128, %s535_s6, %s523_s11  }
  0x40   : > { %s390_s7 = ssub.s32 %s2167_s29, %s2825_s5  ;;  %p50_p11 = scmp.ge.s32.totalorder %s2827_s8, 2 }
  0x41   : > { %p391_p12 = scmp.eq.s32.totalorder %s390_s7, 0  ;;  %p2412_p13 = por %p400_p9, %p63_p10 }
  0x42   : > { %s623_s6 = sand.u32 1, %s2143_s23   ;;  %s2829_s8 = smov (%p50_p11, %s2827_s8), 0 }
  0x43   : > { %2780 = sst [smem:[#allocation28_spill]] %s2829_s8  ;;  %s52_s11 = ssub.s32 %s2171_s30, %s2829_s8 }
  0x44   : > { %s2420_s14 = scalar_select %p391_p12, %s2143_s23, %s393_s24  }
  0x45   : > { %p53_p2 = scmp.eq.s32.totalorder %s52_s11, 0  ;;  %s627_s20 = scalar_lea.hbm %s2782_s13, %s2167_s29 }
  0x46   : > { %2781 = sst [smem:[#allocation29_spill]] %s2420_s14  ;;  %s629_s12 = sshll.u32 %s627_s20, 4  ;;  %s630_s12 = int_to_ptr.hbm [resolvable:$true] %s629_s12 }
  0x47   : > { %s624_s7 = scalar_lea.vmem [#allocation5], %s623_s6  ;;  %p1762_p10 = pnand %p1771_p7, %p2412_p13 }
  0x48   : > { %s631_s5 = sshll.u32 %s624_s7, 4  ;;  %s622_s2 = scalar_lea.sflag [#allocation6], %s621_s10  ;;  %s632_s5 = int_to_ptr.vmem [resolvable:$true] %s631_s5 }
  0x49   : > { %s2429_s3 = scalar_select %p53_p2, %s2155_s26, %s55_s15  }
  0x4a   : > { %1764 = dma.hbm_to_vmem [thread:$0]  (!%p1762_p10), %s630_s12, 16, %s632_s5, %s622_s2  }
  0x4b   : > { %2783 = sst [smem:[#allocation30_spill]] %s2429_s3  ;;  %640 = sbr.rel (%p2346_p6) target bundleno = 2321 (0x911), region = 84 }
  0x4c   : > { %s2438_s24 = sand.u32 (!%p2346_p6), 1, %s2151_s25  }
  0x4d   : > { %s2731_s6 = sshll.u32 (!%p2346_p6), %s2438_s24, 3  ;;  %s643_s15 = scalar_lea.sflag (!%p2346_p6), [#allocation3], %s2438_s24 }
  0x4e   : > { %s2444_s11 = scalar_lea.vmem (!%p2346_p6), [#allocation2], %s2731_s6 }
  0x50   : > { %2114 = dma.done.wait (%p2381_p3), %s643_s15, 128  }
  0x51   : > { %2116 = vsyncadd (%p2381_p3), %s643_s15, 4294967168  ;;  %s652_s2 = sand.u32 1, %s2333_s17   ;;  %s654_s5 = sand.u32 1, %s2139_s22  }
  0x52   : > { %s653_s19 = scalar_lea.sflag [#allocation6], %s652_s2  ;;  %s2452_s10 = scalar_lea.vmem [#allocation5], %s654_s5 }
  0x53   : > { %2118 = dma.done.wait (%p2342_p5), %s653_s19, 16  }
  0x54   : > { %2120 = vsyncadd (%p2342_p5), %s653_s19, 4294967280 }
  0x55   : > { %2122 = dma.done.wait (%p69_p1), [#allocation6], 16  }
  0x56   : > { %2124 = vsyncadd (%p69_p1), [#allocation6], 4294967280 }
  0x57   : > { %2126 = dma.done.wait (%p69_p1), [#allocation9], 16  }
  0x58   : > { %2128 = vsyncadd (%p69_p1), [#allocation9], 4294967280  ;;  %p763_p6 = scmp.lt.s32.totalorder %s2163_s28, 1  ;;  %p766_p3 = scmp.lt.s32.totalorder %s2159_s27, 1 }
  0x59   : > { %s2787_s3 = sld [smem:[#allocation34_spill]]  ;;  %p1665_p1 = scmp.ne.s32.totalorder %s2159_s27, 0 }
  0x5a   : > { %s2469_s18 = scalar_select %p763_p6, %s2163_s28, 1 }
  0x5b   : > { %s2472_s9 = scalar_select %p766_p3, %s2159_s27, 1 }
  0x5c   : > { %s2788_s14 = sld [smem:[#allocation36_spill]] }
  0x5d   : > { %s1723_s6 = sshll.u32 %s2472_s9, 4  ;;  %s2790_s19 = sld [smem:[#allocation38_spill]] }
  0x5e   : > { %s2791_s21 = sld [smem:[#allocation39_spill]]  ;;  %s1726_s28 = sshll.u32 %s2472_s9, 5 }
  0x5f   : > { %s2494_s26 = scalar_lea.vmem %s2787_s3, %s1723_s6  ;;  %s2792_s30 = sld [smem:[#allocation40_spill]] }
  0x60   : > { %s2793_s17 = sld [smem:[#allocation41_spill]] }
  0x61   : > { %s2794_s12 = sld [smem:[#allocation42_spill]] }
  0x62   : > { %s2499_s23 = scalar_lea.vmem %s2788_s14, %s1723_s6 }
  0x63   : > { %s790_s7 = scalar_lea.vmem %s2790_s19, %s2472_s9  ;;  %s2795_s19 = sshll.u32 %s2438_s24, 3 }
  0x64   : > { %s793_s8 = scalar_lea.vmem %s2791_s21, %s2472_s9  ;;  %s2530_s2 = scalar_lea.vmem [#allocation10], %s2795_s19 }
  0x65   : > { %s2516_s22 = scalar_lea.vmem %s2792_s30, %s1723_s6  ;;  %811 = sbr.rel (%p1665_p1) target bundleno = 108 (0x6c), region = 104 }
  0x66   : > { %s801_s0 = scalar_lea.vmem %s2793_s17, %s2472_s9 }
  0x67   : > { %s2526_s15 = scalar_lea.vmem %s2794_s12, %s1726_s28 }
  0x6a   : > { %v812_v0 = vld [vmem:[%s2444_s11] sm:$0xff]  ;;  %vm813_vm0 = vcmask 261120  }
  0x6b   : > { %814 = vst.msk [vmem:[%s2530_s2] sm:$0xff] %vm813_vm0, %v812_v0 }
  0x6c PF: > { %vm819_vm1 = vcmask 261120   ;;  %v2179_v3 = vmov 32.0   ;;  %v1728_v15 = vld [vmem:[%s2494_s26 + $0x8] sm:$0xff]  ;;  %v1727_v16 = vld [vmem:[%s2494_s26] sm:$0xff]  ;;  %s2796_s6 = sld [smem:[#allocation32_spill]]  ;;  %s2180_s14 = smov 104  }
  0x6d   : > { %1889 = vrcp.f32 %v2179_v3  ;;  %903 = vmatpush.bf16.msra.mxu0 %v1728_v15  ;;  %s2798_s13 = sld [smem:[#allocation33_spill]]  ;;  %s2181_s17 = smov 120   ;;  %vm917_vm9 = vcmask 64512   ;;  %vm954_vm10 = vcmask 1043456   ;;  %vm1152_vm11 = vcmask 130048  }
  0x6e   : > { %s2800_s30 = sld [smem:[#allocation35_spill]]  ;;  %s2182_s16 = smov 96   ;;  %vm1154_vm12 = vcmask 195584  }
  0x6f   : > { %s2183_s20 = smov 72   ;;  %s2184_s12 = smov 88  }
  0x70   : > { %s2185_s19 = smov 112   ;;  %s2186_s26 = smov 80  }
  0x71   : > { %904 = vmatpush.bf16.msra.mxu0 %v1727_v16  ;;  %s2188_s5 = smov 56   ;;  %s2189_s4 = smov 40  }
  0x72   : > { %v2536_v1 = vld [vmem:[%s2530_s2] sm:$0xff]  ;;  %s2797_s11 = scalar_lea.vmem %s2796_s6, %s2472_s9  ;;  %s2192_s29 = smov 24  }
  0x73   : > { %v820_v2 = vsel %vm819_vm1, %v2536_v1, 0.0  ;;  %v1890_v4 = vpop.eup %1889  ;;  %v1880_v34 = vld [vmem:[%s2797_s11] ss:$0 sm:$0xff]  ;;  %s2799_s21 = scalar_lea.vmem %s2798_s13, %s2472_s9  ;;  %s2802_s11 = scalar_lea.vmem %s2709_s1, %s2469_s18 }
  0x74   : > { %821 = vadd.xlane.f32.xlu0 %v820_v2  ;;  %v824_v5 = vmul.f32 32.0, %v1890_v4  ;;  %vm828_vm2 = vweird.f32 %v1890_v4  ;;  %v1881_v41 = vld [vmem:[%s2799_s21] ss:$0 sm:$0xff]  ;;  %s2801_s25 = scalar_lea.vmem %s2800_s30, %s2472_s9  ;;  %s2187_s18 = smov 64  }
  0x75   : > { %v1882_v46 = vld [vmem:[%s2801_s25] ss:$0 sm:$0xff]  ;;  %s2190_s13 = smov 48   ;;  %s2191_s21 = smov 8  }
  0x76   : > { %v825_v6 = vsub.f32 1.0, %v824_v5  ;;  %v1883_v62 = vld [vmem:[%s2802_s11] ss:$0 sm:$0xff]  ;;  %s2193_s3 = smov 16   ;;  %p1718_p5 = scmp.ne.s32.totalorder %s2159_s27, 1 }
  0x78   : > { %v826_v7 = vmul.f32 %v1890_v4, %v825_v6 }
  0x7a   : > { %v827_v8 = vadd.f32 %v1890_v4, %v826_v7 }
  0x7c   : > { %v2540_v9 = vsel %vm828_vm2, %v1890_v4, %v827_v8 }
  0xe7   : > { %v822_v10 = vpop.xlane.xlu0 %821 }
  0xe8   : > { %v830_v11 = vmul.f32 %v2540_v9, %v822_v10 }
  0xea   : > { %v831_v12 = vsub.f32 %v2536_v1, %v830_v11 }
  0xec   : > { %v832_v13 = vmul.f32 %v831_v12, %v831_v12  ;;  %v852_v39 = vmul.f32 %v1880_v34, %v831_v12 }
  0xee   : > { %v833_v14 = vsel %vm819_vm1, %v832_v13, 0.0 }
  0xef   : > { %834 = vadd.xlane.f32.xlu0 %v833_v14 }
 0x162   : > { %v835_v17 = vpop.xlane.xlu0 %834 }
 0x163   : > { %v836_v18 = vmul.f32 0.032258064, %v835_v17 }
 0x165   : > { %1891 = vrsqrt.f32 %v836_v18  ;;  %vm844_vm3 = vcmp.eq.f32.partialorder %v836_v18, inf  ;;  %v847_v26 = vand.u32 2147483648, %v836_v18  ;;  %vm846_vm4 = vcmp.eq.f32.partialorder %v836_v18, 0.0 }
 0x16b   : > { %v1892_v19 = vpop.eup %1891 }
 0x16c   : > { %v838_v20 = vmul.f32 %v1892_v19, %v836_v18 }
 0x16e   : > { %v839_v21 = vmul.f32 %v1892_v19, %v838_v20 }
 0x170   : > { %v840_v22 = vmul.f32 0.5, %v839_v21 }
 0x172   : > { %v841_v23 = vsub.f32 1.5, %v840_v22 }
 0x174   : > { %v842_v24 = vmul.f32 %v1892_v19, %v841_v23 }
 0x176   : > { %v843_v25 = vmul.f32 %v842_v24, %v836_v18 }
 0x178   : > { %v845_v27 = vsel %vm844_vm3, %v836_v18, %v843_v25 }
 0x179   : > { %v848_v28 = vsel %vm846_vm4, %v847_v26, %v845_v27  ;;  %vm1317_vm4 = vcmask 523264  }
 0x17a   : > { %v853_v29 = vadd.f32 1e-06, %v848_v28 }
 0x17c   : > { %1893 = vrcp.f32 %v853_v29  ;;  %v865_v33 = vand.u32 2147483648, %v853_v29  ;;  %v863_v36 = vand.u32 2147483647, %v853_v29  ;;  %vm859_vm6 = vweird.f32 %v853_v29 }
 0x17e   : > { %v866_v38 = vor.u32 1.1754944e-38, %v865_v33  ;;  %vm864_vm8 = vcmp.eq.f32.partialorder %v863_v36, 8.507059e+37 }
 0x182   : > { %v1894_v30 = vpop.eup %1893 }
 0x183   : > { %v855_v31 = vmul.f32 %v1894_v30, %v853_v29  ;;  %vm860_vm5 = vweird.f32 %v1894_v30 }
 0x184   : > { %vm861_vm7 = vmor %vm859_vm6, %vm860_vm5 }
 0x185   : > { %v856_v32 = vsub.f32 1.0, %v855_v31 }
 0x187   : > { %v857_v35 = vmul.f32 %v1894_v30, %v856_v32 }
 0x189   : > { %v858_v37 = vadd.f32 %v1894_v30, %v857_v35 }
 0x18b   : > { %v862_v40 = vsel %vm861_vm7, %v1894_v30, %v858_v37 }
 0x18c   : > { %v867_v42 = vsel %vm864_vm8, %v866_v38, %v862_v40 }
 0x18d   : > { %v868_v43 = vmul.f32 %v867_v42, %v852_v39 }
 0x18f   : > { %v872_v44 = vadd.f32 %v1881_v41, %v868_v43 }
 0x191   : > { %v873_v45 = vpack.c.bf16 %v872_v44, %v872_v44 }
 0x193   : > { %1674 = vmatmul.msk.bf16.vlgmr.msra.gmra.mxu0 %vm819_vm1, %v873_v45 }
 0x210   : > { %v906_v47 = vpop.f32.mrf.mxu0 }
 0x211   : > { %v907_v48 = vadd.f32 %v1882_v46, %v906_v47 }
 0x213   : > { %v2563_v49 = vpack.c.bf16 %v907_v48, %v907_v48 }
 0x215   : > { %1083 = vrot.lane.b32.xlu0 %v2563_v49, %s2180_s14  ;;  %971 = vrot.lane.b32.xlu2 %v2563_v49, %s2181_s17  ;;  %s2803_s14 = sld [smem:[#allocation37_spill]] }
 0x216   : > { %915 = vrot.lane.b32.xlu1 %v2563_v49, %s2182_s16 }
 0x218   : > { %v908_v50 = vpop.f32.mrf.mxu0 }
 0x21b   : > { %s2804_s17 = scalar_lea.vmem %s2803_s14, %s2472_s9 }
 0x21d   : > { %1085 = vrot.lane.b32.xlu2 %v2563_v49, %s2183_s20 }
 0x21e   : > { %973 = vrot.lane.b32.xlu1 %v2563_v49, %s2184_s12 }
 0x225   : > { %1027 = vrot.lane.b32.xlu2 %v2563_v49, %s2185_s19 }
 0x226   : > { %1029 = vrot.lane.b32.xlu1 %v2563_v49, %s2186_s26 }
 0x26f   : > { %v972_v51 = vpop.permute.xlu2 %971 }
 0x277   : > { %v1086_v54 = vpop.permute.xlu2 %1085 }
 0x278   : > { %v1091_v57 = vsel %vm917_vm9, %v1086_v54, 0 }
 0x27f   : > { %v1028_v60 = vpop.permute.xlu2 %1027 }
 0x287   : > { %v1084_v61 = vpop.permute.xlu0 %1083 }
 0x288   : > { %v916_v52 = vpop.permute.xlu1 %915 }
 0x289   : > { %v922_v53 = vsel %vm917_vm9, %v916_v52, 0 }
 0x28a   : > { %931 = vmatpush.bf16.xpose.msra.mxu1 %v922_v53 }
 0x290   : > { %v974_v55 = vpop.permute.xlu1 %973 }
 0x291   : > { %1675 = vmatmul.msk.bf16.vlgmr.msra.gmra.mxu1 %vm917_vm9, %v2563_v49  ;;  %v979_v56 = vsel %vm917_vm9, %v974_v55, 0 }
 0x292   : > { %988 = vmatpush.bf16.xpose.msra.mxu3 %v979_v56 }
 0x298   : > { %v1030_v58 = vpop.permute.xlu1 %1029 }
 0x299   : > { %1677 = vmatmul.msk.bf16.vlgmr.msra.gmra.mxu3 %vm917_vm9, %v972_v51  ;;  %v1035_v59 = vsel %vm917_vm9, %v1030_v58, 0 }
 0x29a   : > { %1100 = vmatpush.bf16.xpose.msrb.mxu3 %v1091_v57  ;;  %1044 = vmatpush.bf16.xpose.msrb.mxu0 %v1035_v59 }
 0x2a1   : > { %1679 = vmatmul.msk.bf16.vlgmr.msrb.gmra.mxu0 %vm917_vm9, %v1028_v60 }
 0x2a9   : > { %1681 = vmatmul.msk.bf16.vlgmr.msrb.gmra.mxu3 %vm917_vm9, %v1084_v61 }
 0x30e   : > { %v933_v63 = vpop.f32.mrf.mxu1 }
 0x30f   : > { %v934_v0 = vadd.f32 %v1883_v62, %v933_v63 }
 0x311   : > { %v937_v2 = vsel %vm917_vm9, %v934_v0, -inf }
 0x312   : > { %938 = vmax.xlane.f32.xlu1 %v937_v2 }
 0x316   : > { %v935_v3 = vpop.f32.mrf.mxu1 }
 0x31c   : > { %v990_v4 = vpop.f32.mrf.mxu3 }
 0x31d   : > { %v991_v5 = vadd.f32 %v1883_v62, %v990_v4 }
 0x31e   : > { %v1046_v6 = vpop.f32.mrf.mxu0 }
 0x31f   : > { %v994_v7 = vsel %vm917_vm9, %v991_v5, -inf  ;;  %v1047_v8 = vadd.f32 %v1883_v62, %v1046_v6  ;;  %v1730_v6 = vld [vmem:[%s2499_s23 + $0x8] sm:$0xff] }
 0x320   : > { %995 = vmax.xlane.f32.xlu2 %v994_v7  ;;  %1186 = vmatpush.bf16.msra.mxu0 %v1730_v6  ;;  %v1729_v7 = vld [vmem:[%s2499_s23] sm:$0xff] }
 0x321   : > { %v1050_v12 = vsel %vm917_vm9, %v1047_v8, -inf }
 0x324   : > { %v992_v10 = vpop.f32.mrf.mxu3  ;;  %1187 = vmatpush.bf16.msra.mxu0 %v1729_v7 }
 0x326   : > { %v1048_v11 = vpop.f32.mrf.mxu0 }
 0x328   : > { %1051 = vmax.xlane.f32.xlu2 %v1050_v12 }
 0x32c   : > { %v1102_v13 = vpop.f32.mrf.mxu3 }
 0x32d   : > { %v1103_v14 = vadd.f32 %v1883_v62, %v1102_v13 }
 0x32f   : > { %v1106_v15 = vsel %vm917_vm9, %v1103_v14, -inf }
 0x330   : > { %1107 = vmax.xlane.f32.xlu0 %v1106_v15 }
 0x334   : > { %v1104_v16 = vpop.f32.mrf.mxu3 }
 0x335   : > { %v1884_v16 = vld [vmem:[%s2804_s17] ss:$0 sm:$0xff] }
 0x340   : > { %949 = vrot.lane.b32.xlu2 %v2563_v49, %s2187_s18 }
 0x344   : > { %1006 = vrot.lane.b32.xlu0 %v2563_v49, %s2188_s5 }
 0x348   : > { %1118 = vrot.lane.b32.xlu2 %v2563_v49, %s2189_s4 }
 0x34c   : > { %1062 = vrot.lane.b32.xlu0 %v2563_v49, %s2190_s13 }
 0x385   : > { %v939_v17 = vpop.xlane.xlu1 %938 }
 0x386   : > { %v940_v18 = vsub.f32 %v934_v0, %v939_v17 }
 0x388   : > { %v941_v19 = vmul.f32 1.442695, %v940_v18 }
 0x38a   : > { %1895 = vpow2.f32 %v941_v19 }
 0x390   : > { %v1896_v20 = vpop.eup %1895 }
 0x391   : > { %v943_v21 = vsel %vm917_vm9, %v1896_v20, 0.0 }
 0x392   : > { %944 = vadd.xlane.f32.xlu1 %v943_v21 }
 0x393   : > { %v996_v22 = vpop.xlane.xlu2 %995 }
 0x394   : > { %v997_v23 = vsub.f32 %v991_v5, %v996_v22 }
 0x396   : > { %v998_v24 = vmul.f32 1.442695, %v997_v23 }
 0x398   : > { %1897 = vpow2.f32 %v998_v24 }
 0x39b   : > { %v1052_v25 = vpop.xlane.xlu2 %1051 }
 0x39c   : > { %v1053_v32 = vsub.f32 %v1047_v8, %v1052_v25 }
 0x39e   : > { %v1898_v26 = vpop.eup %1897  ;;  %v1054_v34 = vmul.f32 1.442695, %v1053_v32 }
 0x39f   : > { %v1000_v27 = vsel %vm917_vm9, %v1898_v26, 0.0 }
 0x3a0   : > { %1001 = vadd.xlane.f32.xlu1 %v1000_v27  ;;  %v1732_v27 = vld [vmem:[%s2516_s22 + $0x8] sm:$0xff] }
 0x3a3   : > { %v1108_v28 = vpop.xlane.xlu0 %1107  ;;  %v950_v29 = vpop.permute.xlu2 %949 }
 0x3a4   : > { %v1109_v30 = vsub.f32 %v1103_v14, %v1108_v28  ;;  %v956_v31 = vsel %vm954_vm10, %v950_v29, 0 }
 0x3a5   : > { %965 = vmatpush.bf16.msra.mxu2 %v956_v31 }
 0x3a6   : > { %v1110_v33 = vmul.f32 1.442695, %v1109_v30 }
 0x3a8   : > { %1899 = vpow2.f32 %v1110_v33 }
 0x3a9   : > { %1901 = vpow2.f32 %v1054_v34 }
 0x3ab   : > { %v1119_v46 = vpop.permute.xlu2 %1118 }
 0x3ac   : > { %v1124_v48 = vsel %vm954_vm10, %v1119_v46, 0 }
 0x3ae   : > { %v1900_v35 = vpop.eup %1899 }
 0x3af   : > { %v1112_v36 = vsel %vm917_vm9, %v1900_v35, 0.0  ;;  %v1902_v37 = vpop.eup %1901 }
 0x3b0   : > { %1113 = vadd.xlane.f32.xlu1 %v1112_v36  ;;  %v1056_v40 = vsel %vm917_vm9, %v1902_v37, 0.0 }
 0x3b6   : > { %v1007_v38 = vpop.permute.xlu0 %1006 }
 0x3b7   : > { %v1012_v39 = vsel %vm954_vm10, %v1007_v38, 0 }
 0x3b8   : > { %1021 = vmatpush.bf16.msrb.mxu2 %v1012_v39  ;;  %1057 = vadd.xlane.f32.xlu1 %v1056_v40 }
 0x3be   : > { %v1063_v41 = vpop.permute.xlu0 %1062 }
 0x3bf   : > { %v1068_v42 = vsel %vm954_vm10, %v1063_v41, 0 }
 0x3c0   : > { %1077 = vmatpush.bf16.msrb.mxu1 %v1068_v42  ;;  %v1734_v42 = vld [vmem:[%s2526_s15 + $0x8] sm:$0xff] }
 0x3c4   : > { %1272 = vmatpush.bf16.msra.mxu1 %v1732_v27 }
 0x405   : > { %v945_v43 = vpop.xlane.xlu1 %944 }
 0x406   : > { %1903 = vrcp.f32 %v945_v43 }
 0x40c   : > { %v1904_v44 = vpop.eup %1903 }
 0x40d   : > { %v947_v45 = vmul.f32 %v1904_v44, %v1896_v20 }
 0x40f   : > { %v948_v47 = vpack.c.bf16 %v947_v45, %v947_v45 }
 0x411   : > { %1676 = vmatmul.msk.bf16.vlgmr.msra.gmra.mxu2 %vm917_vm9, %v948_v47 }
 0x412   : > { %1133 = vmatpush.bf16.msra.mxu2 %v1124_v48  ;;  %v1885_v48 = vld [vmem:[%s790_s7] ss:$0 sm:$0xff] }
 0x413   : > { %v1002_v49 = vpop.xlane.xlu1 %1001 }
 0x414   : > { %1905 = vrcp.f32 %v1002_v49 }
 0x41a   : > { %v1906_v50 = vpop.eup %1905 }
 0x41b   : > { %v1004_v51 = vmul.f32 %v1906_v50, %v1898_v26 }
 0x41d   : > { %v1005_v52 = vpack.c.bf16 %v1004_v51, %v1004_v51 }
 0x421   : > { %1678 = vmatmul.msk.bf16.vlgmr.msrb.gmra.mxu2 %vm917_vm9, %v1005_v52 }
 0x423   : > { %v1114_v53 = vpop.xlane.xlu1 %1113 }
 0x424   : > { %1907 = vrcp.f32 %v1114_v53 }
 0x42a   : > { %v1908_v54 = vpop.eup %1907 }
 0x42b   : > { %v1116_v55 = vmul.f32 %v1908_v54, %v1900_v35  ;;  %v1058_v56 = vpop.xlane.xlu1 %1057  ;;  %v1736_v35 = vld [vmem:[%s2526_s15 + $0x18] sm:$0xff] }
 0x42c   : > { %1909 = vrcp.f32 %v1058_v56  ;;  %1325 = vmatpush.bf16.msra.mxu3 %v1736_v35 }
 0x42d   : > { %v1117_v57 = vpack.c.bf16 %v1116_v55, %v1116_v55  ;;  %v1886_v55 = vld [vmem:[%s793_s8] ss:$0 sm:$0xff] }
 0x431   : > { %1682 = vmatmul.msk.bf16.vlgmr.msra.gmra.mxu2 %vm917_vm9, %v1117_v57 }
 0x432   : > { %v1910_v58 = vpop.eup %1909 }
 0x433   : > { %v1060_v59 = vmul.f32 %v1910_v58, %v1902_v37  ;;  %v1735_v37 = vld [vmem:[%s2526_s15 + $0x10] sm:$0xff] }
 0x434   : > { %1326 = vmatpush.bf16.msra.mxu3 %v1735_v37 }
 0x435   : > { %v1061_v60 = vpack.c.bf16 %v1060_v59, %v1060_v59 }
 0x437   : > { %1680 = vmatmul.msk.bf16.vlgmr.msrb.gmra.mxu1 %vm917_vm9, %v1061_v60  ;;  %v1733_v60 = vld [vmem:[%s2526_s15] sm:$0xff] }
 0x438   : > { %1327 = vmatpush.bf16.msra.mxu3 %v1734_v42 }
 0x43c   : > { %1328 = vmatpush.bf16.msra.mxu3 %v1733_v60 }
 0x494   : > { %v967_v61 = vpop.f32.mrf.mxu2 }
 0x49c   : > { %v969_v62 = vpop.f32.mrf.mxu2 }
 0x4a4   : > { %v1023_v63 = vpop.f32.mrf.mxu2 }
 0x4a5   : > { %1140 = vrot.lane.b32.xlu1 %v1023_v63, %s2191_s21 }
 0x4ac   : > { %v1025_v0 = vpop.f32.mrf.mxu2 }
 0x4b4   : > { %v1079_v2 = vpop.f32.mrf.mxu1  ;;  %v1135_v3 = vpop.f32.mrf.mxu2 }
 0x4b5   : > { %1148 = vrot.lane.b32.xlu0 %v1135_v3, %s2192_s29  ;;  %1144 = vrot.lane.b32.xlu2 %v1079_v2, %s2193_s3 }
 0x4bc   : > { %v1081_v4 = vpop.f32.mrf.mxu1  ;;  %v1137_v5 = vpop.f32.mrf.mxu2 }
 0x4bd   : > { %v1888_v4 = vld [vmem:[%s2452_s10] ss:$0 sm:$0xff] }
 0x50f   : > { %v1145_v11 = vpop.permute.xlu2 %1144 }
 0x517   : > { %v1141_v8 = vpop.permute.xlu1 %1140 }
 0x518   : > { %v1151_v10 = vsel %vm917_vm9, %v967_v61, %v1141_v8  ;;  %v1887_v61 = vld [vmem:[%s801_s0] ss:$0 sm:$0xff] }
 0x519   : > { %v1153_v13 = vsel %vm1152_vm11, %v1151_v10, %v1145_v11 }
 0x527   : > { %v1149_v12 = vpop.permute.xlu0 %1148 }
 0x528   : > { %v1155_v14 = vsel %vm1154_vm12, %v1153_v13, %v1149_v12 }
 0x529   : > { %v1156_v15 = vpack.c.bf16 %v1155_v14, %v1155_v14 }
 0x52b   : > { %1691 = vmatmul.msk.bf16.vlgmr.msra.gmra.mxu0 %vm819_vm1, %v1156_v15 }
 0x5a8   : > { %v1189_v17 = vpop.f32.mrf.mxu0 }
 0x5a9   : > { %v1190_v18 = vadd.f32 %v1884_v16, %v1189_v17 }
 0x5ab   : > { %v2616_v19 = vadd.f32 %v1190_v18, %v2536_v1  ;;  %v1731_v1 = vld [vmem:[%s2516_s22] sm:$0xff] }
 0x5ac   : > { %1273 = vmatpush.bf16.msra.mxu1 %v1731_v1 }
 0x5ad   : > { %v1196_v20 = vsel %vm819_vm1, %v2616_v19, 0.0 }
 0x5ae   : > { %1197 = vadd.xlane.f32.xlu2 %v1196_v20 }
 0x5b0   : > { %v1191_v21 = vpop.f32.mrf.mxu0 }
 0x621   : > { %v1198_v22 = vpop.xlane.xlu2 %1197 }
 0x622   : > { %v1199_v23 = vmul.f32 %v1198_v22, %v2540_v9 }
 0x624   : > { %v1200_v24 = vsub.f32 %v2616_v19, %v1199_v23 }
 0x626   : > { %v1201_v25 = vmul.f32 %v1200_v24, %v1200_v24  ;;  %v1221_v53 = vmul.f32 %v1885_v48, %v1200_v24 }
 0x628   : > { %v1202_v26 = vsel %vm819_vm1, %v1201_v25, 0.0 }
 0x629   : > { %1203 = vadd.xlane.f32.xlu0 %v1202_v26 }
 0x69c   : > { %v1204_v28 = vpop.xlane.xlu0 %1203 }
 0x69d   : > { %v1205_v29 = vmul.f32 0.032258064, %v1204_v28 }
 0x69f   : > { %1911 = vrsqrt.f32 %v1205_v29  ;;  %vm1213_vm13 = vcmp.eq.f32.partialorder %v1205_v29, inf  ;;  %v1216_v39 = vand.u32 2147483648, %v1205_v29  ;;  %vm1215_vm14 = vcmp.eq.f32.partialorder %v1205_v29, 0.0 }
 0x6a5   : > { %v1912_v30 = vpop.eup %1911 }
 0x6a6   : > { %v1207_v31 = vmul.f32 %v1912_v30, %v1205_v29 }
 0x6a8   : > { %v1208_v32 = vmul.f32 %v1912_v30, %v1207_v31 }
 0x6aa   : > { %v1209_v33 = vmul.f32 0.5, %v1208_v32 }
 0x6ac   : > { %v1210_v34 = vsub.f32 1.5, %v1209_v33 }
 0x6ae   : > { %v1211_v36 = vmul.f32 %v1912_v30, %v1210_v34 }
 0x6b0   : > { %v1212_v38 = vmul.f32 %v1211_v36, %v1205_v29 }
 0x6b2   : > { %v1214_v40 = vsel %vm1213_vm13, %v1205_v29, %v1212_v38 }
 0x6b3   : > { %v1217_v41 = vsel %vm1215_vm14, %v1216_v39, %v1214_v40 }
 0x6b4   : > { %v1222_v43 = vadd.f32 1e-06, %v1217_v41 }
 0x6b6   : > { %1913 = vrcp.f32 %v1222_v43  ;;  %v1234_v47 = vand.u32 2147483648, %v1222_v43  ;;  %v1232_v50 = vand.u32 2147483647, %v1222_v43  ;;  %vm1228_vm0 = vweird.f32 %v1222_v43 }
 0x6b8   : > { %v1235_v52 = vor.u32 1.1754944e-38, %v1234_v47  ;;  %vm1233_vm3 = vcmp.eq.f32.partialorder %v1232_v50, 8.507059e+37 }
 0x6bc   : > { %v1914_v44 = vpop.eup %1913 }
 0x6bd   : > { %v1224_v45 = vmul.f32 %v1914_v44, %v1222_v43  ;;  %vm1229_vm15 = vweird.f32 %v1914_v44 }
 0x6be   : > { %vm1230_vm2 = vmor %vm1228_vm0, %vm1229_vm15 }
 0x6bf   : > { %v1225_v46 = vsub.f32 1.0, %v1224_v45 }
 0x6c1   : > { %v1226_v49 = vmul.f32 %v1914_v44, %v1225_v46 }
 0x6c3   : > { %v1227_v51 = vadd.f32 %v1914_v44, %v1226_v49 }
 0x6c5   : > { %v1231_v54 = vsel %vm1230_vm2, %v1914_v44, %v1227_v51 }
 0x6c6   : > { %v1236_v56 = vsel %vm1233_vm3, %v1235_v52, %v1231_v54 }
 0x6c7   : > { %v1237_v57 = vmul.f32 %v1236_v56, %v1221_v53 }
 0x6c9   : > { %v1241_v58 = vadd.f32 %v1886_v55, %v1237_v57 }
 0x6cb   : > { %v1242_v59 = vpack.c.bf16 %v1241_v58, %v1241_v58 }
 0x6cd   : > { %1700 = vmatmul.msk.bf16.vlgmr.msra.gmra.mxu1 %vm819_vm1, %v1242_v59 }
 0x74a   : > { %v1275_v62 = vpop.f32.mrf.mxu1 }
 0x74b   : > { %v1276_v63 = vadd.f32 %v1887_v61, %v1275_v62 }
 0x74d   : > { %v1279_v0 = vmax.f32 %v1276_v63, 0.0 }
 0x74f   : > { %v1280_v2 = vpack.c.bf16 %v1279_v0, %v1279_v0 }
 0x751   : > { %1717 = vmatmul.msk.bf16.vlgmr.msra.gmra.mxu3 %vm1317_vm4, %v1280_v2 }
 0x752   : > { %v1277_v3 = vpop.f32.mrf.mxu1 }
 0x7d4   : > { %v1330_v5 = vpop.f32.mrf.mxu3 }
 0x7d5   : > { %v1331_v6 = vadd.f32 %v1888_v4, %v1330_v5 }
 0x7d7   : > { %v1334_v7 = vadd.f32 %v1331_v6, %v2616_v19 }
 0x7d8   : > { %1339 = sbr.rel (%p1718_p5) target bundleno = 2300 (0x8fc), region = 108 }
 0x7d9   : > { %1335 = vst.msk [vmem:[%s2530_s2] sm:$0xff] %vm819_vm1, %v1334_v7 }
 0x7dc   : > { %v1332_v8 = vpop.f32.mrf.mxu3 }
 0x7dd   : > { %v1342_v10 = vsel %vm819_vm1, %v1334_v7, 0.0  ;;  %v1915_v31 = vld [vmem:[#allocation7] ss:$0 sm:$0xff]  ;;  %v1916_v38 = vld [vmem:[#allocation8] ss:$0 sm:$0xff] }
 0x7de   : > { %1343 = vadd.xlane.f32.xlu0 %v1342_v10 }
 0x851   : > { %v1344_v11 = vpop.xlane.xlu0 %1343 }
 0x852   : > { %v1345_v12 = vmul.f32 %v1344_v11, %v2540_v9 }
 0x854   : > { %v1346_v13 = vsub.f32 %v1334_v7, %v1345_v12 }
 0x856   : > { %v1347_v14 = vmul.f32 %v1346_v13, %v1346_v13  ;;  %v1367_v36 = vmul.f32 %v1915_v31, %v1346_v13 }
 0x858   : > { %v1348_v15 = vsel %vm819_vm1, %v1347_v14, 0.0 }
 0x859   : > { %1349 = vadd.xlane.f32.xlu0 %v1348_v15 }
 0x8cc   : > { %v1350_v16 = vpop.xlane.xlu0 %1349 }
 0x8cd   : > { %v1351_v17 = vmul.f32 0.032258064, %v1350_v16 }
 0x8cf   : > { %1917 = vrsqrt.f32 %v1351_v17  ;;  %vm1359_vm5 = vcmp.eq.f32.partialorder %v1351_v17, inf  ;;  %v1362_v25 = vand.u32 2147483648, %v1351_v17  ;;  %vm1361_vm6 = vcmp.eq.f32.partialorder %v1351_v17, 0.0 }
 0x8d5   : > { %v1918_v18 = vpop.eup %1917 }
 0x8d6   : > { %v1353_v19 = vmul.f32 %v1918_v18, %v1351_v17 }
 0x8d8   : > { %v1354_v20 = vmul.f32 %v1918_v18, %v1353_v19 }
 0x8da   : > { %v1355_v21 = vmul.f32 0.5, %v1354_v20 }
 0x8dc   : > { %v1356_v22 = vsub.f32 1.5, %v1355_v21 }
 0x8de   : > { %v1357_v23 = vmul.f32 %v1918_v18, %v1356_v22 }
 0x8e0   : > { %v1358_v24 = vmul.f32 %v1357_v23, %v1351_v17 }
 0x8e2   : > { %v1360_v26 = vsel %vm1359_vm5, %v1351_v17, %v1358_v24 }
 0x8e3   : > { %v1363_v9 = vsel %vm1361_vm6, %v1362_v25, %v1360_v26 }
 0x8e4   : > { %v1368_v27 = vadd.f32 1e-06, %v1363_v9 }
 0x8e6   : > { %1919 = vrcp.f32 %v1368_v27  ;;  %v1380_v30 = vand.u32 2147483648, %v1368_v27  ;;  %v1378_v33 = vand.u32 2147483647, %v1368_v27  ;;  %vm1374_vm8 = vweird.f32 %v1368_v27 }
 0x8e8   : > { %v1381_v35 = vor.u32 1.1754944e-38, %v1380_v30  ;;  %vm1379_vm10 = vcmp.eq.f32.partialorder %v1378_v33, 8.507059e+37 }
 0x8ec   : > { %v1920_v1 = vpop.eup %1919 }
 0x8ed   : > { %v1370_v28 = vmul.f32 %v1920_v1, %v1368_v27  ;;  %vm1375_vm7 = vweird.f32 %v1920_v1 }
 0x8ee   : > { %vm1376_vm9 = vmor %vm1374_vm8, %vm1375_vm7 }
 0x8ef   : > { %v1371_v29 = vsub.f32 1.0, %v1370_v28 }
 0x8f1   : > { %v1372_v32 = vmul.f32 %v1920_v1, %v1371_v29 }
 0x8f3   : > { %v1373_v34 = vadd.f32 %v1920_v1, %v1372_v32 }
 0x8f5   : > { %v1377_v37 = vsel %vm1376_vm9, %v1920_v1, %v1373_v34 }
 0x8f6   : > { %v1382_v39 = vsel %vm1379_vm10, %v1381_v35, %v1377_v37 }
 0x8f7   : > { %v1383_v40 = vmul.f32 %v1382_v39, %v1367_v36 }
 0x8f9   : > { %v1387_v41 = vadd.f32 %v1916_v38, %v1383_v40 }
 0x8fb   : > { %1388 = vst.msk [vmem:[%s2530_s2] sm:$0xff] %vm819_vm1, %v1387_v41 }
 0x8fc PF: > { %s2808_s8 = sld [smem:[#allocation21_spill]]  ;;  %s1402_s11 = sshll.u32 %s2530_s2, 4  ;;  %s1403_s11 = int_to_ptr.vmem [resolvable:$true] %s1402_s11 }
 0x8fd   : > { %s2810_s15 = sld [smem:[#allocation46_spill]]  ;;  %s1390_s5 = scalar_lea.sflag [#allocation4], %s2438_s24 }
 0x902   : > { %s1720_s0 = sshll.u32 %s2808_s8, 3 }
 0x903   : > { %s1400_s6 = scalar_lea.hbm %s2810_s15, %s1720_s0  ;;  %s2061_s3 = scalar_lea.hbm %s2810_s15, 16 }
 0x904   : > { %s1404_s18 = sshll.u32 %s1400_s6, 4  ;;  %s1405_s18 = int_to_ptr.hbm [resolvable:$true] %s1404_s18 }
 0x905   : > { %s2055_s4 = sshra.s32 %s1405_s18, 4  ;;  %s2056_s4 = int_to_ptr.hbm [resolvable:$true] %s2055_s4 }
 0x906   : > { %s2057_s13 = scalar_lea.hbm %s2056_s4, 8  ;;  %p2062_p11 = scmp.lt.s32.totalorder %s2056_s4, %s2810_s15 }
 0x907   : > { %p2058_p7 = scmp.ne.s32.totalorder %s2056_s4, %s2057_s13  ;;  %p2063_p12 = scmp.lt.s32.totalorder %s2061_s3, %s2057_s13 }
 0x909   : > { %p2059_p8 = pnand %p2058_p7, %p2375_p0  ;;  %p2064_p13 = por %p2063_p12, %p2062_p11 }
 0x90b   : > { %p2060_p9 = pneg %p2059_p8 }
 0x90d   : > { %p2065_p2 = pnand %p2064_p13, %p2060_p9 }
 0x90f   : > { %2068 = shalt.err (!%p2065_p2)
}
 0x910   : > { %1749 = dma.vmem_to_hbm [thread:$0]  (%p2375_p0), %s1403_s11, 128, %s1405_s18, %s1390_s5  }
 0x911 PF: > { %s2811_s24 = sld [smem:[#allocation24_spill]] }
 0x912   : > { %s2812_s2 = sld [smem:[#allocation18_spill]] }
 0x917   : > { %p1774_p10 = scmp.ge.s32.totalorder %s2811_s24, 2 }
 0x918   : > { %s1416_s17 = sand.u32 1, %s2812_s2  }
 0x919   : > { %p1766_p6 = pnand %p1774_p10, %p2385_p4  ;;  %s1417_s22 = scalar_lea.sflag [#allocation4], %s1416_s17 }
 0x91b   : > { %p1767_p3 = pneg %p1766_p6 }
 0x91d   : > { %2130 = dma.done.wait (%p1767_p3), %s1417_s22, 128  }
 0x91e   : > { %2132 = vsyncadd (%p1767_p3), %s1417_s22, 4294967168  ;;  %s36_s0 = sadd.s32 1, %s2811_s24   ;;  %s2814_s21 = sld [smem:[#allocation16_spill]] }
 0x91f   : > { %p33_p1 = scmp.ge.s32.totalorder %s36_s0, 6   ;;  %s2815_s22 = sld [smem:[#allocation17_spill]] }
 0x920   : > { %s2816_s23 = sld [smem:[#allocation29_spill]] }
 0x921   : > { %s2817_s24 = sld [smem:[#allocation19_spill]] }
 0x922   : > { %s2818_s25 = sld [smem:[#allocation20_spill]] }
 0x923   : > { %s2819_s26 = sld [smem:[#allocation30_spill]]  ;;  %35 = sbr.rel (!%p33_p1) target bundleno = 29 (0x1d), region = 194 }
 0x924   : > { %s2820_s27 = sld [smem:[#allocation22_spill]] }
 0x925   : > { %s2821_s28 = sld [smem:[#allocation23_spill]] }
 0x926   : > { %s2822_s29 = sld [smem:[#allocation27_spill]] }
 0x927   : > { %s2823_s30 = sld [smem:[#allocation28_spill]] }
 0x928   :  { %1423 = vsyncpa [#allocation3], 1 }
 0x929   :  { %1425 = vsyncpa [#allocation3 + $0x1], 1 }
 0x92a   :  { %1426 = vsyncpa [#allocation6], 1 }
 0x92b   :  { %1428 = vsyncpa [#allocation6 + $0x1], 1 }
 0x92c   :  { %1429 = vsyncpa [#allocation9], 1 }
 0x92d   :  { %1430 = vsyncpa [#allocation4], 1 }
 0x92e   :  { %1432 = vsyncpa [#allocation4 + $0x1], 1 }

</bundles_post_ra>
